<compile_context>
chip_gen: v6e
topology: v6e:2x2x1
jax: 0.10.0
libtpu: 0.0.40
codegen_flags: <defaults>
</compile_context>

<pallas_src>
import jax
import jax.numpy as jnp
from jax.experimental import pallas as pl
from jax.experimental.pallas import tpu as pltpu


def residual_block_kernel(x_ref, w1_ref, b1_ref, w2_ref, b2_ref, o_ref,
                          xpad_ref, acc_ref):
    # x_ref : (H, W, C)        full image (conv input + residual), f32
    # w1_ref: (9, C, 2C)       3x3 conv weights, taps flattened ky*3+kx, bf16
    # b1_ref: (1, 2C)          f32
    # w2_ref: (2C, C)          1x1 conv weights, bf16
    # b2_ref: (1, C)           f32
    # o_ref : (TH, W, C)       output row-tile
    # xpad_ref: VMEM scratch (TH+2, W+2, C) bf16   (padded, ReLU'd slab)
    # acc_ref : VMEM scratch (TH*W, 2C) f32        (3x3-conv accumulator)
    TH, W, C = o_ref.shape
    C2 = w1_ref.shape[2]

    h = pl.program_id(1)
    n_h = pl.num_programs(1)
    row0 = pl.multiple_of(h * TH, TH)

    # ---- padded + ReLU'd bf16 slab for this row tile (1-row halo) -------
    # Zero only the 1-wide border strips; the interior is always rewritten.
    zrow = jnp.zeros((1, W + 2, C), xpad_ref.dtype)
    zcol = jnp.zeros((TH + 2, 1, C), xpad_ref.dtype)
    xpad_ref[0:1, :, :] = zrow                      # top border / halo slot
    xpad_ref[TH + 1:TH + 2, :, :] = zrow            # bottom border / halo slot
    xpad_ref[:, 0:1, :] = zcol                      # left border column
    xpad_ref[:, W + 1:W + 2, :] = zcol              # right border column

    x_tile = x_ref[pl.ds(row0, TH)]                 # (TH, W, C)
    xpad_ref[1:TH + 1, 1:W + 1, :] = (
        jnp.maximum(x_tile, 0.0).astype(xpad_ref.dtype))

    @pl.when(h > 0)
    def _():                                        # top halo row (ReLU'd)
        top = x_ref[pl.ds(row0 - 1, 1)]
        xpad_ref[0:1, 1:W + 1, :] = jnp.maximum(top, 0.0).astype(xpad_ref.dtype)

    @pl.when(h < n_h - 1)
    def _():                                        # bottom halo row (ReLU'd)
        bot = x_ref[pl.ds(row0 + TH, 1)]
        xpad_ref[TH + 1:TH + 2, 1:W + 1, :] = (
            jnp.maximum(bot, 0.0).astype(xpad_ref.dtype))

    # ---- Conv3x3 (C -> 2C): 9 shifted (M, C) x (C, 2C) matmuls, accumulated
    # into an f32 VMEM scratch (no chain of full-size f32 temporaries).
    for kx in range(3):
        # One W-shifted 2-D slab per kx; the ky shift is a cheap leading-dim
        # slice of the reshaped slab (aligned when W % 8 == 0).
        sh = xpad_ref[:, kx:kx + W, :].reshape((TH + 2) * W, C)   # bf16
        for ky in range(3):
            patch = sh[ky * W:(ky + TH) * W]                      # (M, C)
            contrib = jnp.dot(patch, w1_ref[ky * 3 + kx],
                              preferred_element_type=jnp.float32)
            if kx == 0 and ky == 0:
                acc_ref[...] = contrib
            else:
                acc_ref[...] += contrib

    hidden = jnp.maximum(acc_ref[...] + b1_ref[...], 0.0)         # (M, 2C) f32

    # ---- Conv1x1 (2C -> C): single (M, 2C) x (2C, C) matmul --------------
    out = jnp.dot(hidden.astype(jnp.bfloat16), w2_ref[...],
                  preferred_element_type=jnp.float32) + b2_ref[...]

    # ---- residual add in f32, single cast at the end ---------------------
    res = x_ref[pl.ds(row0, TH)].astype(jnp.float32)
    o_ref[...] = (res + out.reshape(TH, W, C)).astype(o_ref.dtype)


def prepare_residual_block_params(w1_oihw, b1, w2_oihw, b2):
    """One-time repack of PyTorch-layout (OIHW) params for the kernel."""
    C2, C = w1_oihw.shape[0], w1_oihw.shape[1]
    w1_taps = jnp.transpose(w1_oihw, (2, 3, 1, 0)).reshape(9, C, C2)
    w1_taps = w1_taps.astype(jnp.bfloat16)                      # (9, C, 2C)
    w2_io = jnp.transpose(w2_oihw[:, :, 0, 0], (1, 0)).astype(jnp.bfloat16)
    b1_2d = b1.reshape(1, C2).astype(jnp.float32)
    b2_2d = b2.reshape(1, C).astype(jnp.float32)
    return w1_taps, b1_2d, w2_io, b2_2d


def _vmem_limit_bytes():
    """Per-generation scoped-VMEM limit (≈52 MiB v7x, ≈100 MiB v5e/v6e)."""
    try:
        cap = int(pltpu.get_tpu_info().vmem_capacity_bytes)
    except Exception:
        cap = 64 * 1024 * 1024
    return max(32 * 1024 * 1024, min(cap - 12 * 1024 * 1024, 100 * 1024 * 1024))


def _choose_tile_h(H, W, C, C2, x_itemsize, vmem_limit):
    """Largest row-tile TH (divisor of H) whose live set fits the budget."""
    budget = int(vmem_limit * 0.5)          # headroom for pipelining / spills
    cands = [d for d in dict.fromkeys((H, 64, 32, 16, 8, 4, 2, 1))
             if d <= H and H % d == 0]
    fixed = 2 * H * W * C * x_itemsize                       # x block (dbl-buf)
    fixed += 2 * ((9 * C * C2 + C2 * C) * 2 + (C2 + C) * 4)  # weights + biases
    for th in cands:
        need = fixed
        need += 2 * th * W * C * x_itemsize                  # o block (dbl-buf)
        need += (th + 2) * (W + 2) * C * 2                   # xpad scratch bf16
        need += th * W * C2 * 4                              # acc scratch f32
        need += 4 * th * W * C2 * 4                          # matmul temporaries
        if need <= budget:
            return th
    return cands[-1]


def residual_block_nhwc(x_nhwc, params, tile_h=None):
    """NHWC Pallas forward of ResidualBlock (params from prepare_...)."""
    w1_taps, b1_2d, w2_io, b2_2d = params
    N, H, W, C = x_nhwc.shape
    C2 = w1_taps.shape[2]

    vmem_limit = _vmem_limit_bytes()
    if tile_h is None:
        tile_h = _choose_tile_h(H, W, C, C2, x_nhwc.dtype.itemsize, vmem_limit)
    assert H % tile_h == 0, (H, tile_h)
    n_h = H // tile_h

    return pl.pallas_call(
        residual_block_kernel,
        out_shape=jax.ShapeDtypeStruct((N, H, W, C), x_nhwc.dtype),
        grid_spec=pltpu.PrefetchScalarGridSpec(
            num_scalar_prefetch=0,
            grid=(N, n_h),
            in_specs=[
                # Full image per n (index ignores h -> DMA'd once per image),
                # gives the 1-row halo for free.
                pl.BlockSpec((None, H, W, C), lambda n, h: (n, 0, 0, 0)),   # x
                pl.BlockSpec((9, C, C2), lambda n, h: (0, 0, 0)),           # w1
                pl.BlockSpec((1, C2), lambda n, h: (0, 0)),                 # b1
                pl.BlockSpec((C2, C), lambda n, h: (0, 0)),                 # w2
                pl.BlockSpec((1, C), lambda n, h: (0, 0)),                  # b2
            ],
            out_specs=pl.BlockSpec((None, tile_h, W, C),
                                   lambda n, h: (n, h, 0, 0)),
            scratch_shapes=[
                pltpu.VMEM((tile_h + 2, W + 2, C), jnp.bfloat16),  # padded slab
                pltpu.VMEM((tile_h * W, C2), jnp.float32),         # 3x3 accum
            ],
        ),
        compiler_params=pltpu.CompilerParams(
            # Batch images and row-tiles are independent -> both TCs usable
            # even at batch 1 on v7x.
            dimension_semantics=("parallel", "parallel"),
            vmem_limit_bytes=vmem_limit,
        ),
    )(x_nhwc, w1_taps, b1_2d, w2_io, b2_2d)


def residual_block_reference(x_nchw, w1_oihw, b1, w2_oihw, b2,
                             conv_dtype=jnp.float32):
    """Pure-JAX NCHW reference. conv_dtype=bf16 mirrors the kernel's
    bf16-operand / f32-accumulate matmul precision for a tight comparison."""
    def conv(x, w, pad):
        return jax.lax.conv_general_dilated(
            x.astype(conv_dtype), w.astype(conv_dtype), (1, 1), pad,
            dimension_numbers=("NCHW", "OIHW", "NCHW"),
            preferred_element_type=jnp.float32)

    h = jax.nn.relu(x_nchw)
    h = conv(h, w1_oihw, [(1, 1), (1, 1)]) + b1[None, :, None, None]
    h = jax.nn.relu(h)
    h = conv(h, w2_oihw, [(0, 0), (0, 0)]) + b2[None, :, None, None]
    return x_nchw + h


if __name__ == "__main__":
    # Small deterministic shapes: batch=2, emb_size=4, spatial=16.
    N, C, H, W = 2, 4, 16, 16
    C2 = C * 2

    key = jax.random.PRNGKey(0)
    kx_, kw1, kb1, kw2, kb2 = jax.random.split(key, 5)

    x_nchw = jax.random.normal(kx_, (N, C, H, W), dtype=jnp.float32)
    # PyTorch Conv2d weight layout is OIHW; biases are (out,).
    w1_oihw = jax.random.normal(kw1, (C2, C, 3, 3), dtype=jnp.float32) * 0.1
    b1 = jax.random.normal(kb1, (C2,), dtype=jnp.float32) * 0.1
    w2_oihw = jax.random.normal(kw2, (C, C2, 1, 1), dtype=jnp.float32) * 0.1
    b2 = jax.random.normal(kb2, (C,), dtype=jnp.float32) * 0.1

    # One-time param repack (hoisted out of the per-call path).
    params = prepare_residual_block_params(w1_oihw, b1, w2_oihw, b2)

    # Layout change only at the model boundary; the stack would stay NHWC.
    x_nhwc = jnp.transpose(x_nchw, (0, 2, 3, 1))

    # Row-tiled path (exercises the halo handling: H=16, TH=8 -> 2 tiles).
    out_tiled = jax.block_until_ready(
        residual_block_nhwc(x_nhwc, params, tile_h=8))
    # Auto-chosen tile (whole image at this size) must agree.
    out_auto = jax.block_until_ready(residual_block_nhwc(x_nhwc, params))
    assert out_tiled.shape == (N, H, W, C)
    tile_vs_whole = float(jnp.max(jnp.abs(out_tiled - out_auto)))
    assert jnp.allclose(out_tiled, out_auto, atol=1e-5, rtol=1e-5), tile_vs_whole

    out_nchw = jnp.transpose(out_tiled, (0, 3, 1, 2))

    # Tight check vs. a reference using the same bf16-operand / f32-accumulate
    # matmul precision as the kernel.
    ref_bf16 = residual_block_reference(x_nchw, w1_oihw, b1, w2_oihw, b2,
                                        conv_dtype=jnp.bfloat16)
    err_bf16 = float(jnp.max(jnp.abs(out_nchw - ref_bf16)))
    assert jnp.allclose(out_nchw, ref_bf16, atol=1e-2, rtol=1e-2), err_bf16

    # Looser check vs. the pure-f32 (PyTorch-semantics) reference; deviation is
    # bounded by bf16 operand rounding of the MXU inputs.
    ref_f32 = residual_block_reference(x_nchw, w1_oihw, b1, w2_oihw, b2)
    err_f32 = float(jnp.max(jnp.abs(out_nchw - ref_f32)))
    assert jnp.allclose(out_nchw, ref_f32, atol=5e-2, rtol=5e-2), err_f32

    print("KERNEL_OK")
</pallas_src>

<mosaic_0001>
module attributes {stable_mosaic.version = 11 : i64} {
  func.func @residual_block_kernel(%arg0: i32, %arg1: i32, %arg2: memref<1x16x16x4xf32, #tpu.memory_space<vmem>>, %arg3: memref<9x4x8xbf16, #tpu.memory_space<vmem>>, %arg4: memref<1x8xf32, #tpu.memory_space<vmem>>, %arg5: memref<8x4xbf16, #tpu.memory_space<vmem>>, %arg6: memref<1x4xf32, #tpu.memory_space<vmem>>, %arg7: memref<1x8x16x4xf32, #tpu.memory_space<vmem>>, %arg8: memref<10x18x4xbf16, #tpu.memory_space<vmem>>, %arg9: memref<128x8xf32, #tpu.memory_space<vmem>>) attributes {dimension_semantics = [#tpu.dimension_semantics<parallel>, #tpu.dimension_semantics<parallel>], iteration_bounds = array<i64: 2, 2>, scalar_prefetch = 0 : i64, scratch_operands = 2 : i64, tpu.core_type = #tpu.core_type<tc>, window_params = [{transform_indices = @transform_0, window_bounds = array<i64: 1, 16, 16, 4>}, {pipeline_mode = #tpu.pipeline_mode<synchronous>, transform_indices = @transform_1, window_bounds = array<i64: 9, 4, 8>}, {pipeline_mode = #tpu.pipeline_mode<synchronous>, transform_indices = @transform_2, window_bounds = array<i64: 1, 8>}, {pipeline_mode = #tpu.pipeline_mode<synchronous>, transform_indices = @transform_3, window_bounds = array<i64: 8, 4>}, {pipeline_mode = #tpu.pipeline_mode<synchronous>, transform_indices = @transform_4, window_bounds = array<i64: 1, 4>}, {transform_indices = @transform_5, window_bounds = array<i64: 1, 8, 16, 4>}]} {
    %c8_i32 = arith.constant 8 : i32
    %0 = arith.muli %arg1, %c8_i32 : i32
    %1 = tpu.assume_multiple %0, 8 : i32
    %cst = arith.constant 0.000000e+00 : bf16
    %2 = vector.broadcast %cst : bf16 to vector<1x18x4xbf16>
    %cst_0 = arith.constant 0.000000e+00 : bf16
    %3 = vector.broadcast %cst_0 : bf16 to vector<10x1x4xbf16>
    %c0 = arith.constant 0 : index
    %c0_1 = arith.constant 0 : index
    %c0_2 = arith.constant 0 : index
    %4 = vector.load %arg8[%c0, %c0_1, %c0_2] : memref<10x18x4xbf16, #tpu.memory_space<vmem>>, vector<1x18x4xbf16>
    tpu.vector_store %arg8[%c0, %c0_1, %c0_2], %2 {strides = array<i32>} : memref<10x18x4xbf16, #tpu.memory_space<vmem>>, vector<1x18x4xbf16>,
    %c9 = arith.constant 9 : index
    %c0_3 = arith.constant 0 : index
    %c0_4 = arith.constant 0 : index
    %5 = vector.load %arg8[%c9, %c0_3, %c0_4] : memref<10x18x4xbf16, #tpu.memory_space<vmem>>, vector<1x18x4xbf16>
    tpu.vector_store %arg8[%c9, %c0_3, %c0_4], %2 {strides = array<i32>} : memref<10x18x4xbf16, #tpu.memory_space<vmem>>, vector<1x18x4xbf16>,
    %c0_5 = arith.constant 0 : index
    %c0_6 = arith.constant 0 : index
    %c0_7 = arith.constant 0 : index
    %6 = vector.load %arg8[%c0_5, %c0_6, %c0_7] : memref<10x18x4xbf16, #tpu.memory_space<vmem>>, vector<10x1x4xbf16>
    tpu.vector_store %arg8[%c0_5, %c0_6, %c0_7], %3 {strides = array<i32>} : memref<10x18x4xbf16, #tpu.memory_space<vmem>>, vector<10x1x4xbf16>,
    %c0_8 = arith.constant 0 : index
    %c17 = arith.constant 17 : index
    %c0_9 = arith.constant 0 : index
    %7 = vector.load %arg8[%c0_8, %c17, %c0_9] : memref<10x18x4xbf16, #tpu.memory_space<vmem>>, vector<10x1x4xbf16>
    tpu.vector_store %arg8[%c0_8, %c17, %c0_9], %3 {strides = array<i32>} : memref<10x18x4xbf16, #tpu.memory_space<vmem>>, vector<10x1x4xbf16>,
    %c0_10 = arith.constant 0 : index
    %8 = arith.index_cast %1 : i32 to index
    %c0_11 = arith.constant 0 : index
    %c0_12 = arith.constant 0 : index
    %9 = vector.load %arg2[%c0_10, %8, %c0_11, %c0_12] : memref<1x16x16x4xf32, #tpu.memory_space<vmem>>, vector<1x8x16x4xf32>
    %10 = vector.shape_cast %9 : vector<1x8x16x4xf32> to vector<8x16x4xf32>
    %cst_13 = arith.constant 0.000000e+00 : f32
    %11 = vector.broadcast %cst_13 : f32 to vector<8x16x4xf32>
    %12 = arith.maximumf %10, %11 : vector<8x16x4xf32>
    %13 = arith.truncf %12 : vector<8x16x4xf32> to vector<8x16x4xbf16>
    %c1 = arith.constant 1 : index
    %c1_14 = arith.constant 1 : index
    %c0_15 = arith.constant 0 : index
    %14 = vector.load %arg8[%c1, %c1_14, %c0_15] : memref<10x18x4xbf16, #tpu.memory_space<vmem>>, vector<8x16x4xbf16>
    tpu.vector_store %arg8[%c1, %c1_14, %c0_15], %13 {strides = array<i32>} : memref<10x18x4xbf16, #tpu.memory_space<vmem>>, vector<8x16x4xbf16>,
    %c0_i32 = arith.constant 0 : i32
    %15 = arith.cmpi sgt, %arg1, %c0_i32 : i32
    %16 = arith.extui %15 : i1 to i32
    %c0_i32_16 = arith.constant 0 : i32
    %17 = arith.cmpi ne, %16, %c0_i32_16 : i32
    scf.if %17 {
      %c1_i32_107 = arith.constant 1 : i32
      %108 = arith.subi %1, %c1_i32_107 : i32
      %c0_108 = arith.constant 0 : index
      %109 = arith.index_cast %108 : i32 to index
      %c0_109 = arith.constant 0 : index
      %c0_110 = arith.constant 0 : index
      %110 = vector.load %arg2[%c0_108, %109, %c0_109, %c0_110] : memref<1x16x16x4xf32, #tpu.memory_space<vmem>>, vector<1x1x16x4xf32>
      %111 = vector.shape_cast %110 : vector<1x1x16x4xf32> to vector<1x16x4xf32>
      %cst_111 = arith.constant 0.000000e+00 : f32
      %112 = vector.broadcast %cst_111 : f32 to vector<1x16x4xf32>
      %113 = arith.maximumf %111, %112 : vector<1x16x4xf32>
      %114 = arith.truncf %113 : vector<1x16x4xf32> to vector<1x16x4xbf16>
      %c0_112 = arith.constant 0 : index
      %c1_113 = arith.constant 1 : index
      %c0_114 = arith.constant 0 : index
      %115 = vector.load %arg8[%c0_112, %c1_113, %c0_114] : memref<10x18x4xbf16, #tpu.memory_space<vmem>>, vector<1x16x4xbf16>
      tpu.vector_store %arg8[%c0_112, %c1_113, %c0_114], %114 {strides = array<i32>} : memref<10x18x4xbf16, #tpu.memory_space<vmem>>, vector<1x16x4xbf16>,
    } else {
    }
    %c1_i32 = arith.constant 1 : i32
    %18 = arith.cmpi slt, %arg1, %c1_i32 : i32
    %19 = arith.extui %18 : i1 to i32
    %c0_i32_17 = arith.constant 0 : i32
    %20 = arith.cmpi ne, %19, %c0_i32_17 : i32
    scf.if %20 {
      %c8_i32_107 = arith.constant 8 : i32
      %108 = arith.addi %1, %c8_i32_107 : i32
      %c0_108 = arith.constant 0 : index
      %109 = arith.index_cast %108 : i32 to index
      %c0_109 = arith.constant 0 : index
      %c0_110 = arith.constant 0 : index
      %110 = vector.load %arg2[%c0_108, %109, %c0_109, %c0_110] : memref<1x16x16x4xf32, #tpu.memory_space<vmem>>, vector<1x1x16x4xf32>
      %111 = vector.shape_cast %110 : vector<1x1x16x4xf32> to vector<1x16x4xf32>
      %cst_111 = arith.constant 0.000000e+00 : f32
      %112 = vector.broadcast %cst_111 : f32 to vector<1x16x4xf32>
      %113 = arith.maximumf %111, %112 : vector<1x16x4xf32>
      %114 = arith.truncf %113 : vector<1x16x4xf32> to vector<1x16x4xbf16>
      %c9_112 = arith.constant 9 : index
      %c1_113 = arith.constant 1 : index
      %c0_114 = arith.constant 0 : index
      %115 = vector.load %arg8[%c9_112, %c1_113, %c0_114] : memref<10x18x4xbf16, #tpu.memory_space<vmem>>, vector<1x16x4xbf16>
      tpu.vector_store %arg8[%c9_112, %c1_113, %c0_114], %114 {strides = array<i32>} : memref<10x18x4xbf16, #tpu.memory_space<vmem>>, vector<1x16x4xbf16>,
    } else {
    }
    %c0_18 = arith.constant 0 : index
    %c0_19 = arith.constant 0 : index
    %c0_20 = arith.constant 0 : index
    %21 = vector.load %arg8[%c0_18, %c0_19, %c0_20] : memref<10x18x4xbf16, #tpu.memory_space<vmem>>, vector<10x16x4xbf16>
    %22 = vector.shape_cast %21 : vector<10x16x4xbf16> to vector<160x4xbf16>
    %23 = vector.extract_strided_slice %22 {offsets = [0, 0], sizes = [128, 4], strides = [1, 1]} : vector<160x4xbf16> to vector<128x4xbf16>
    %c0_21 = arith.constant 0 : index
    %c0_22 = arith.constant 0 : index
    %c0_23 = arith.constant 0 : index
    %24 = vector.load %arg3[%c0_21, %c0_22, %c0_23] : memref<9x4x8xbf16, #tpu.memory_space<vmem>>, vector<1x4x8xbf16>
    %25 = vector.shape_cast %24 : vector<1x4x8xbf16> to vector<4x8xbf16>
    %cst_24 = arith.constant dense<0.000000e+00> : vector<128x8xf32>
    %26 = tpu.matmul %23, %25, %cst_24 {dimension_numbers = #tpu.dot_dimension_numbers<[1], [0], [0], [1], [0, 0, 1, 1], [], []>} : vector<128x4xbf16>, vector<4x8xbf16>, vector<128x8xf32> -> vector<128x8xf32>
    %c0_25 = arith.constant 0 : index
    %c0_26 = arith.constant 0 : index
    %27 = vector.load %arg9[%c0_25, %c0_26] : memref<128x8xf32, #tpu.memory_space<vmem>>, vector<128x8xf32>
    tpu.vector_store %arg9[%c0_25, %c0_26], %26 {strides = array<i32>} : memref<128x8xf32, #tpu.memory_space<vmem>>, vector<128x8xf32>,
    %28 = vector.extract_strided_slice %22 {offsets = [16, 0], sizes = [128, 4], strides = [1, 1]} : vector<160x4xbf16> to vector<128x4xbf16>
    %c3 = arith.constant 3 : index
    %c0_27 = arith.constant 0 : index
    %c0_28 = arith.constant 0 : index
    %29 = vector.load %arg3[%c3, %c0_27, %c0_28] : memref<9x4x8xbf16, #tpu.memory_space<vmem>>, vector<1x4x8xbf16>
    %30 = vector.shape_cast %29 : vector<1x4x8xbf16> to vector<4x8xbf16>
    %cst_29 = arith.constant dense<0.000000e+00> : vector<128x8xf32>
    %31 = tpu.matmul %28, %30, %cst_29 {dimension_numbers = #tpu.dot_dimension_numbers<[1], [0], [0], [1], [0, 0, 1, 1], [], []>} : vector<128x4xbf16>, vector<4x8xbf16>, vector<128x8xf32> -> vector<128x8xf32>
    %c0_30 = arith.constant 0 : index
    %c0_31 = arith.constant 0 : index
    %32 = vector.load %arg9[%c0_30, %c0_31] : memref<128x8xf32, #tpu.memory_space<vmem>>, vector<128x8xf32>
    %33 = arith.addf %32, %31 : vector<128x8xf32>
    %c0_32 = arith.constant 0 : index
    %c0_33 = arith.constant 0 : index
    %34 = vector.load %arg9[%c0_32, %c0_33] : memref<128x8xf32, #tpu.memory_space<vmem>>, vector<128x8xf32>
    tpu.vector_store %arg9[%c0_32, %c0_33], %33 {strides = array<i32>} : memref<128x8xf32, #tpu.memory_space<vmem>>, vector<128x8xf32>,
    %35 = vector.extract_strided_slice %22 {offsets = [32, 0], sizes = [128, 4], strides = [1, 1]} : vector<160x4xbf16> to vector<128x4xbf16>
    %c6 = arith.constant 6 : index
    %c0_34 = arith.constant 0 : index
    %c0_35 = arith.constant 0 : index
    %36 = vector.load %arg3[%c6, %c0_34, %c0_35] : memref<9x4x8xbf16, #tpu.memory_space<vmem>>, vector<1x4x8xbf16>
    %37 = vector.shape_cast %36 : vector<1x4x8xbf16> to vector<4x8xbf16>
    %cst_36 = arith.constant dense<0.000000e+00> : vector<128x8xf32>
    %38 = tpu.matmul %35, %37, %cst_36 {dimension_numbers = #tpu.dot_dimension_numbers<[1], [0], [0], [1], [0, 0, 1, 1], [], []>} : vector<128x4xbf16>, vector<4x8xbf16>, vector<128x8xf32> -> vector<128x8xf32>
    %c0_37 = arith.constant 0 : index
    %c0_38 = arith.constant 0 : index
    %39 = vector.load %arg9[%c0_37, %c0_38] : memref<128x8xf32, #tpu.memory_space<vmem>>, vector<128x8xf32>
    %40 = arith.addf %39, %38 : vector<128x8xf32>
    %c0_39 = arith.constant 0 : index
    %c0_40 = arith.constant 0 : index
    %41 = vector.load %arg9[%c0_39, %c0_40] : memref<128x8xf32, #tpu.memory_space<vmem>>, vector<128x8xf32>
    tpu.vector_store %arg9[%c0_39, %c0_40], %40 {strides = array<i32>} : memref<128x8xf32, #tpu.memory_space<vmem>>, vector<128x8xf32>,
    %c0_41 = arith.constant 0 : index
    %c1_42 = arith.constant 1 : index
    %c0_43 = arith.constant 0 : index
    %42 = vector.load %arg8[%c0_41, %c1_42, %c0_43] : memref<10x18x4xbf16, #tpu.memory_space<vmem>>, vector<10x16x4xbf16>
    %43 = vector.shape_cast %42 : vector<10x16x4xbf16> to vector<160x4xbf16>
    %44 = vector.extract_strided_slice %43 {offsets = [0, 0], sizes = [128, 4], strides = [1, 1]} : vector<160x4xbf16> to vector<128x4xbf16>
    %c1_44 = arith.constant 1 : index
    %c0_45 = arith.constant 0 : index
    %c0_46 = arith.constant 0 : index
    %45 = vector.load %arg3[%c1_44, %c0_45, %c0_46] : memref<9x4x8xbf16, #tpu.memory_space<vmem>>, vector<1x4x8xbf16>
    %46 = vector.shape_cast %45 : vector<1x4x8xbf16> to vector<4x8xbf16>
    %cst_47 = arith.constant dense<0.000000e+00> : vector<128x8xf32>
    %47 = tpu.matmul %44, %46, %cst_47 {dimension_numbers = #tpu.dot_dimension_numbers<[1], [0], [0], [1], [0, 0, 1, 1], [], []>} : vector<128x4xbf16>, vector<4x8xbf16>, vector<128x8xf32> -> vector<128x8xf32>
    %c0_48 = arith.constant 0 : index
    %c0_49 = arith.constant 0 : index
    %48 = vector.load %arg9[%c0_48, %c0_49] : memref<128x8xf32, #tpu.memory_space<vmem>>, vector<128x8xf32>
    %49 = arith.addf %48, %47 : vector<128x8xf32>
    %c0_50 = arith.constant 0 : index
    %c0_51 = arith.constant 0 : index
    %50 = vector.load %arg9[%c0_50, %c0_51] : memref<128x8xf32, #tpu.memory_space<vmem>>, vector<128x8xf32>
    tpu.vector_store %arg9[%c0_50, %c0_51], %49 {strides = array<i32>} : memref<128x8xf32, #tpu.memory_space<vmem>>, vector<128x8xf32>,
    %51 = vector.extract_strided_slice %43 {offsets = [16, 0], sizes = [128, 4], strides = [1, 1]} : vector<160x4xbf16> to vector<128x4xbf16>
    %c4 = arith.constant 4 : index
    %c0_52 = arith.constant 0 : index
    %c0_53 = arith.constant 0 : index
    %52 = vector.load %arg3[%c4, %c0_52, %c0_53] : memref<9x4x8xbf16, #tpu.memory_space<vmem>>, vector<1x4x8xbf16>
    %53 = vector.shape_cast %52 : vector<1x4x8xbf16> to vector<4x8xbf16>
    %cst_54 = arith.constant dense<0.000000e+00> : vector<128x8xf32>
    %54 = tpu.matmul %51, %53, %cst_54 {dimension_numbers = #tpu.dot_dimension_numbers<[1], [0], [0], [1], [0, 0, 1, 1], [], []>} : vector<128x4xbf16>, vector<4x8xbf16>, vector<128x8xf32> -> vector<128x8xf32>
    %c0_55 = arith.constant 0 : index
    %c0_56 = arith.constant 0 : index
    %55 = vector.load %arg9[%c0_55, %c0_56] : memref<128x8xf32, #tpu.memory_space<vmem>>, vector<128x8xf32>
    %56 = arith.addf %55, %54 : vector<128x8xf32>
    %c0_57 = arith.constant 0 : index
    %c0_58 = arith.constant 0 : index
    %57 = vector.load %arg9[%c0_57, %c0_58] : memref<128x8xf32, #tpu.memory_space<vmem>>, vector<128x8xf32>
    tpu.vector_store %arg9[%c0_57, %c0_58], %56 {strides = array<i32>} : memref<128x8xf32, #tpu.memory_space<vmem>>, vector<128x8xf32>,
    %58 = vector.extract_strided_slice %43 {offsets = [32, 0], sizes = [128, 4], strides = [1, 1]} : vector<160x4xbf16> to vector<128x4xbf16>
    %c7 = arith.constant 7 : index
    %c0_59 = arith.constant 0 : index
    %c0_60 = arith.constant 0 : index
    %59 = vector.load %arg3[%c7, %c0_59, %c0_60] : memref<9x4x8xbf16, #tpu.memory_space<vmem>>, vector<1x4x8xbf16>
    %60 = vector.shape_cast %59 : vector<1x4x8xbf16> to vector<4x8xbf16>
    %cst_61 = arith.constant dense<0.000000e+00> : vector<128x8xf32>
    %61 = tpu.matmul %58, %60, %cst_61 {dimension_numbers = #tpu.dot_dimension_numbers<[1], [0], [0], [1], [0, 0, 1, 1], [], []>} : vector<128x4xbf16>, vector<4x8xbf16>, vector<128x8xf32> -> vector<128x8xf32>
    %c0_62 = arith.constant 0 : index
    %c0_63 = arith.constant 0 : index
    %62 = vector.load %arg9[%c0_62, %c0_63] : memref<128x8xf32, #tpu.memory_space<vmem>>, vector<128x8xf32>
    %63 = arith.addf %62, %61 : vector<128x8xf32>
    %c0_64 = arith.constant 0 : index
    %c0_65 = arith.constant 0 : index
    %64 = vector.load %arg9[%c0_64, %c0_65] : memref<128x8xf32, #tpu.memory_space<vmem>>, vector<128x8xf32>
    tpu.vector_store %arg9[%c0_64, %c0_65], %63 {strides = array<i32>} : memref<128x8xf32, #tpu.memory_space<vmem>>, vector<128x8xf32>,
    %c0_66 = arith.constant 0 : index
    %c2 = arith.constant 2 : index
    %c0_67 = arith.constant 0 : index
    %65 = vector.load %arg8[%c0_66, %c2, %c0_67] : memref<10x18x4xbf16, #tpu.memory_space<vmem>>, vector<10x16x4xbf16>
    %66 = vector.shape_cast %65 : vector<10x16x4xbf16> to vector<160x4xbf16>
    %67 = vector.extract_strided_slice %66 {offsets = [0, 0], sizes = [128, 4], strides = [1, 1]} : vector<160x4xbf16> to vector<128x4xbf16>
    %c2_68 = arith.constant 2 : index
    %c0_69 = arith.constant 0 : index
    %c0_70 = arith.constant 0 : index
    %68 = vector.load %arg3[%c2_68, %c0_69, %c0_70] : memref<9x4x8xbf16, #tpu.memory_space<vmem>>, vector<1x4x8xbf16>
    %69 = vector.shape_cast %68 : vector<1x4x8xbf16> to vector<4x8xbf16>
    %cst_71 = arith.constant dense<0.000000e+00> : vector<128x8xf32>
    %70 = tpu.matmul %67, %69, %cst_71 {dimension_numbers = #tpu.dot_dimension_numbers<[1], [0], [0], [1], [0, 0, 1, 1], [], []>} : vector<128x4xbf16>, vector<4x8xbf16>, vector<128x8xf32> -> vector<128x8xf32>
    %c0_72 = arith.constant 0 : index
    %c0_73 = arith.constant 0 : index
    %71 = vector.load %arg9[%c0_72, %c0_73] : memref<128x8xf32, #tpu.memory_space<vmem>>, vector<128x8xf32>
    %72 = arith.addf %71, %70 : vector<128x8xf32>
    %c0_74 = arith.constant 0 : index
    %c0_75 = arith.constant 0 : index
    %73 = vector.load %arg9[%c0_74, %c0_75] : memref<128x8xf32, #tpu.memory_space<vmem>>, vector<128x8xf32>
    tpu.vector_store %arg9[%c0_74, %c0_75], %72 {strides = array<i32>} : memref<128x8xf32, #tpu.memory_space<vmem>>, vector<128x8xf32>,
    %74 = vector.extract_strided_slice %66 {offsets = [16, 0], sizes = [128, 4], strides = [1, 1]} : vector<160x4xbf16> to vector<128x4xbf16>
    %c5 = arith.constant 5 : index
    %c0_76 = arith.constant 0 : index
    %c0_77 = arith.constant 0 : index
    %75 = vector.load %arg3[%c5, %c0_76, %c0_77] : memref<9x4x8xbf16, #tpu.memory_space<vmem>>, vector<1x4x8xbf16>
    %76 = vector.shape_cast %75 : vector<1x4x8xbf16> to vector<4x8xbf16>
    %cst_78 = arith.constant dense<0.000000e+00> : vector<128x8xf32>
    %77 = tpu.matmul %74, %76, %cst_78 {dimension_numbers = #tpu.dot_dimension_numbers<[1], [0], [0], [1], [0, 0, 1, 1], [], []>} : vector<128x4xbf16>, vector<4x8xbf16>, vector<128x8xf32> -> vector<128x8xf32>
    %c0_79 = arith.constant 0 : index
    %c0_80 = arith.constant 0 : index
    %78 = vector.load %arg9[%c0_79, %c0_80] : memref<128x8xf32, #tpu.memory_space<vmem>>, vector<128x8xf32>
    %79 = arith.addf %78, %77 : vector<128x8xf32>
    %c0_81 = arith.constant 0 : index
    %c0_82 = arith.constant 0 : index
    %80 = vector.load %arg9[%c0_81, %c0_82] : memref<128x8xf32, #tpu.memory_space<vmem>>, vector<128x8xf32>
    tpu.vector_store %arg9[%c0_81, %c0_82], %79 {strides = array<i32>} : memref<128x8xf32, #tpu.memory_space<vmem>>, vector<128x8xf32>,
    %81 = vector.extract_strided_slice %66 {offsets = [32, 0], sizes = [128, 4], strides = [1, 1]} : vector<160x4xbf16> to vector<128x4xbf16>
    %c8 = arith.constant 8 : index
    %c0_83 = arith.constant 0 : index
    %c0_84 = arith.constant 0 : index
    %82 = vector.load %arg3[%c8, %c0_83, %c0_84] : memref<9x4x8xbf16, #tpu.memory_space<vmem>>, vector<1x4x8xbf16>
    %83 = vector.shape_cast %82 : vector<1x4x8xbf16> to vector<4x8xbf16>
    %cst_85 = arith.constant dense<0.000000e+00> : vector<128x8xf32>
    %84 = tpu.matmul %81, %83, %cst_85 {dimension_numbers = #tpu.dot_dimension_numbers<[1], [0], [0], [1], [0, 0, 1, 1], [], []>} : vector<128x4xbf16>, vector<4x8xbf16>, vector<128x8xf32> -> vector<128x8xf32>
    %c0_86 = arith.constant 0 : index
    %c0_87 = arith.constant 0 : index
    %85 = vector.load %arg9[%c0_86, %c0_87] : memref<128x8xf32, #tpu.memory_space<vmem>>, vector<128x8xf32>
    %86 = arith.addf %85, %84 : vector<128x8xf32>
    %c0_88 = arith.constant 0 : index
    %c0_89 = arith.constant 0 : index
    %87 = vector.load %arg9[%c0_88, %c0_89] : memref<128x8xf32, #tpu.memory_space<vmem>>, vector<128x8xf32>
    tpu.vector_store %arg9[%c0_88, %c0_89], %86 {strides = array<i32>} : memref<128x8xf32, #tpu.memory_space<vmem>>, vector<128x8xf32>,
    %c0_90 = arith.constant 0 : index
    %c0_91 = arith.constant 0 : index
    %88 = vector.load %arg9[%c0_90, %c0_91] : memref<128x8xf32, #tpu.memory_space<vmem>>, vector<128x8xf32>
    %c0_92 = arith.constant 0 : index
    %c0_93 = arith.constant 0 : index
    %89 = vector.load %arg4[%c0_92, %c0_93] : memref<1x8xf32, #tpu.memory_space<vmem>>, vector<1x8xf32>
    %90 = vector.broadcast %89 : vector<1x8xf32> to vector<128x8xf32>
    %91 = arith.addf %88, %90 : vector<128x8xf32>
    %cst_94 = arith.constant 0.000000e+00 : f32
    %92 = vector.broadcast %cst_94 : f32 to vector<128x8xf32>
    %93 = arith.maximumf %91, %92 : vector<128x8xf32>
    %94 = arith.truncf %93 : vector<128x8xf32> to vector<128x8xbf16>
    %c0_95 = arith.constant 0 : index
    %c0_96 = arith.constant 0 : index
    %95 = vector.load %arg5[%c0_95, %c0_96] : memref<8x4xbf16, #tpu.memory_space<vmem>>, vector<8x4xbf16>
    %cst_97 = arith.constant dense<0.000000e+00> : vector<128x4xf32>
    %96 = tpu.matmul %94, %95, %cst_97 {dimension_numbers = #tpu.dot_dimension_numbers<[1], [0], [0], [1], [0, 0, 1, 1], [], []>} : vector<128x8xbf16>, vector<8x4xbf16>, vector<128x4xf32> -> vector<128x4xf32>
    %c0_98 = arith.constant 0 : index
    %c0_99 = arith.constant 0 : index
    %97 = vector.load %arg6[%c0_98, %c0_99] : memref<1x4xf32, #tpu.memory_space<vmem>>, vector<1x4xf32>
    %98 = vector.broadcast %97 : vector<1x4xf32> to vector<128x4xf32>
    %99 = arith.addf %96, %98 : vector<128x4xf32>
    %c0_100 = arith.constant 0 : index
    %100 = arith.index_cast %1 : i32 to index
    %c0_101 = arith.constant 0 : index
    %c0_102 = arith.constant 0 : index
    %101 = vector.load %arg2[%c0_100, %100, %c0_101, %c0_102] : memref<1x16x16x4xf32, #tpu.memory_space<vmem>>, vector<1x8x16x4xf32>
    %102 = vector.shape_cast %101 : vector<1x8x16x4xf32> to vector<8x16x4xf32>
    %103 = vector.shape_cast %99 : vector<128x4xf32> to vector<8x16x4xf32>
    %104 = arith.addf %102, %103 : vector<8x16x4xf32>
    %c0_103 = arith.constant 0 : index
    %c0_104 = arith.constant 0 : index
    %c0_105 = arith.constant 0 : index
    %c0_106 = arith.constant 0 : index
    %105 = vector.load %arg7[%c0_103, %c0_104, %c0_105, %c0_106] : memref<1x8x16x4xf32, #tpu.memory_space<vmem>>, vector<1x8x16x4xf32>
    %106 = vector.shape_cast %105 : vector<1x8x16x4xf32> to vector<8x16x4xf32>
    %107 = vector.shape_cast %104 : vector<8x16x4xf32> to vector<1x8x16x4xf32>
    tpu.vector_store %arg7[%c0_103, %c0_104, %c0_105, %c0_106], %107 {strides = array<i32>} : memref<1x8x16x4xf32, #tpu.memory_space<vmem>>, vector<1x8x16x4xf32>,
    return
  }
  func.func @transform_0(%arg0: i32, %arg1: i32) -> (i32, i32, i32, i32) {
    %c0_i32 = arith.constant 0 : i32
    %c0_i32_0 = arith.constant 0 : i32
    %c0_i32_1 = arith.constant 0 : i32
    %c0_i32_2 = arith.constant 0 : i32
    return %arg0, %c0_i32, %c0_i32_0, %c0_i32_1 : i32, i32, i32, i32
  }
  func.func @transform_1(%arg0: i32, %arg1: i32) -> (i32, i32, i32) {
    %c0_i32 = arith.constant 0 : i32
    %c0_i32_0 = arith.constant 0 : i32
    %c0_i32_1 = arith.constant 0 : i32
    %c0_i32_2 = arith.constant 0 : i32
    return %c0_i32, %c0_i32_0, %c0_i32_1 : i32, i32, i32
  }
  func.func @transform_2(%arg0: i32, %arg1: i32) -> (i32, i32) {
    %c0_i32 = arith.constant 0 : i32
    %c0_i32_0 = arith.constant 0 : i32
    %c0_i32_1 = arith.constant 0 : i32
    return %c0_i32, %c0_i32_0 : i32, i32
  }
  func.func @transform_3(%arg0: i32, %arg1: i32) -> (i32, i32) {
    %c0_i32 = arith.constant 0 : i32
    %c0_i32_0 = arith.constant 0 : i32
    %c0_i32_1 = arith.constant 0 : i32
    return %c0_i32, %c0_i32_0 : i32, i32
  }
  func.func @transform_4(%arg0: i32, %arg1: i32) -> (i32, i32) {
    %c0_i32 = arith.constant 0 : i32
    %c0_i32_0 = arith.constant 0 : i32
    %c0_i32_1 = arith.constant 0 : i32
    return %c0_i32, %c0_i32_0 : i32, i32
  }
  func.func @transform_5(%arg0: i32, %arg1: i32) -> (i32, i32, i32, i32) {
    %c0_i32 = arith.constant 0 : i32
    %c0_i32_0 = arith.constant 0 : i32
    %c0_i32_1 = arith.constant 0 : i32
    return %arg0, %arg1, %c0_i32, %c0_i32_0 : i32, i32, i32, i32
  }
}

</mosaic_0001>

<bundles_post_ra>
// kernel: tpu_custom_call.1
= control target key start
LH: loop header
LB: loop body
LE: loop exit
PB: predicated region body
PF: predicated region fallthrough
CT: control target
= control target key end

     0   :  { %s3603_s18 = smov 0   ;;  %s3605_s19 = smov 0   ;;  %s4396_s0 = inlined_call_operand.vmem [shape: f32[2,16,16,4], index: 0, kind: input, shape index: {}]   ;;  %s4397_s1 = inlined_call_operand.vmem [shape: bf16[9,4,8], index: 1, kind: input, shape index: {}]   ;;  %s4398_s2 = inlined_call_operand.vmem [shape: f32[1,8], index: 2, kind: input, shape index: {}]   ;;  %s4399_s3 = inlined_call_operand.vmem [shape: bf16[8,4], index: 3, kind: input, shape index: {}]   ;;  %s4400_s4 = inlined_call_operand.vmem [shape: f32[1,4], index: 4, kind: input, shape index: {}]   ;;  %s4401_s5 = inlined_call_operand.vmem [shape: f32[2,16,16,4], index: 5, kind: output, shape index: {}]  }
   0x1   :  { %s3607_s20 = smov 0   ;;  %s3609_s21 = smov 0  }
   0x2   :  { %s3611_s22 = smov 0  }
   0x3 LB: > { %s24_s23 = sadd.s32 1, %s3562_s20  ;;  %s27_s24 = sadd.s32 1, %s3566_s21  ;;  %s3570_s22 = sphi %s3611_s22, %s15_s22   ;;  %s3566_s21 = sphi %s3609_s21, %s4417_s21   ;;  %s3562_s20 = sphi %s3607_s20, %s4416_s20   ;;  %s3558_s19 = sphi %s3605_s19, %s4415_s19   ;;  %s3554_s18 = sphi %s3603_s18, %s4414_s18  }
   0x4   : > { %p25_p0 = scmp.ge.s32.totalorder %s24_s23, 2  ;;  %p3009_p1 = scmp.ge.s32.totalorder %s3570_s22, 1 }
   0x5   : > { %p201_p2 = scmp.lt.s32.totalorder %s3570_s22, 5 }
   0x6   : > { %s4419_s23 = smov (%p25_p0, %s24_s23), 0  ;;  %s4421_s24 = smov (!%p25_p0, %s27_s24), %s3566_s21 }
   0x7   : > { %p202_p3 = pnand %p3009_p1, %p201_p2  ;;  %p29_p4 = scmp.ge.s32.totalorder %s4421_s24, 2 }
   0x8   : > { %p234_p5 = scmp.lt.s32.totalorder (!%p202_p3), %s3558_s19, 1  ;;  %s3701_s26 = sshll.u32 (!%p202_p3), %s3554_s18, 3 }
   0x9   : > { %s4423_s24 = smov (%p29_p4, %s4421_s24), 0  ;;  %205 = sbr.rel (%p202_p3) target bundleno = 687 (0x2af), region = 40 }
   0xa   : > { %p242_p6 = scmp.lt.s32.totalorder (!%p202_p3), %s3701_s26, 15  ;;  %s3179_s6 = sshll.u32 (!%p202_p3), %s3554_s18, 7 }
   0xb   : > { %p3034_p7 = scmp.le.s32.totalorder (!%p202_p3), %s3554_s18, 0 }
   0xe   : > { %vm252_vm0 = vcmask 27648   ;;  %vm255_vm1 = vcmask 24576   ;;  %vm262_vm2 = vsmask.f32 256  ;;  %v3572_v0 = vmov 0   ;;  %s4425_s19 = smov (!%p234_p5, %s3558_s19), 1 }
   0xf   : > { %253 = vst.msk [vmem:[#allocation2] sm:$0xf] %vm252_vm0, %v3572_v0  ;;  %254 = vst.msk [vmem:[#allocation2 + $0x4] sm:$0xf] %vm252_vm0, %v3572_v0  ;;  %vm294_vm4 = vsmask.f32 7938 }
  0x10   : > { %258 = vst.msk [vmem:[#allocation2 + $0x6c] sm:$0xf] %vm252_vm0, %v3572_v0  ;;  %259 = vst.msk [vmem:[#allocation2 + $0x70] sm:$0xf] %vm252_vm0, %v3572_v0  ;;  %v267_v2 = vld [vmem:[#allocation2 + $0xc] sm:$0x1] }
  0x11   : > { %256 = vst.msk [vmem:[#allocation2 + $0x8] sm:$0x1] %vm255_vm1, %v3572_v0  ;;  %vm3645_vm3 = vmand %vm255_vm1, %vm262_vm2  ;;  %v270_v4 = vld [vmem:[#allocation2 + $0x18] sm:$0x1]  ;;  %v273_v5 = vld [vmem:[#allocation2 + $0x24] sm:$0x1] }
  0x12   : > { %260 = vst.msk [vmem:[#allocation2 + $0x74] sm:$0x1] %vm255_vm1, %v3572_v0  ;;  %v268_v3 = vsel %vm3645_vm3, 0, %v267_v2  ;;  %vm3659_vm5 = vmand %vm255_vm1, %vm294_vm4  ;;  %v271_v7 = vsel %vm3645_vm3, 0, %v270_v4  ;;  %v274_v8 = vsel %vm3645_vm3, 0, %v273_v5  ;;  %s3178_s25 = sshll.u32 %s4425_s19, 8 }
  0x13   : > { %269 = vst [vmem:[#allocation2 + $0xc] sm:$0x1] %v268_v3  ;;  %v276_v9 = vld [vmem:[#allocation2 + $0x30] sm:$0x1]  ;;  %v279_v10 = vld [vmem:[#allocation2 + $0x3c] sm:$0x1]  ;;  %s3708_s29 = scalar_lea.vmem %s4396_s0, %s3178_s25  ;;  %vm3738_vm8 = vmand %vm252_vm0, %vm294_vm4 }
  0x14   : > { %272 = vst [vmem:[#allocation2 + $0x18] sm:$0x1] %v271_v7  ;;  %275 = vst [vmem:[#allocation2 + $0x24] sm:$0x1] %v274_v8  ;;  %v277_v11 = vsel %vm3645_vm3, 0, %v276_v9  ;;  %v280_v12 = vsel %vm3645_vm3, 0, %v279_v10  ;;  %s3715_s8 = scalar_lea.vmem %s3708_s29, %s3179_s6 }
  0x15   : > { %v282_v13 = vld [vmem:[#allocation2 + $0x48] sm:$0x1]  ;;  %v285_v14 = vld [vmem:[#allocation2 + $0x54] sm:$0x1]  ;;  %278 = vst [vmem:[#allocation2 + $0x30] sm:$0x1] %v277_v11 }
  0x16   : > { %281 = vst [vmem:[#allocation2 + $0x3c] sm:$0x1] %v280_v12  ;;  %v283_v15 = vsel %vm3645_vm3, 0, %v282_v13  ;;  %v286_v16 = vsel %vm3645_vm3, 0, %v285_v14  ;;  %v288_v17 = vld [vmem:[#allocation2 + $0x60] sm:$0x1] }
  0x17   : > { %v299_v18 = vld [vmem:[#allocation2 + $0x14] sm:$0x1]  ;;  %284 = vst [vmem:[#allocation2 + $0x48] sm:$0x1] %v283_v15  ;;  %287 = vst [vmem:[#allocation2 + $0x54] sm:$0x1] %v286_v16 }
  0x18   : > { %v289_v19 = vsel %vm3645_vm3, 0, %v288_v17  ;;  %v300_v20 = vsel %vm3659_vm5, 0, %v299_v18  ;;  %v302_v21 = vld [vmem:[#allocation2 + $0x20] sm:$0x1]  ;;  %v305_v22 = vld [vmem:[#allocation2 + $0x2c] sm:$0x1] }
  0x19   : > { %290 = vst [vmem:[#allocation2 + $0x60] sm:$0x1] %v289_v19  ;;  %301 = vst [vmem:[#allocation2 + $0x14] sm:$0x1] %v300_v20  ;;  %v303_v23 = vsel %vm3659_vm5, 0, %v302_v21  ;;  %v306_v24 = vsel %vm3659_vm5, 0, %v305_v22 }
  0x1a   : > { %v308_v25 = vld [vmem:[#allocation2 + $0x38] sm:$0x1]  ;;  %v311_v26 = vld [vmem:[#allocation2 + $0x44] sm:$0x1]  ;;  %304 = vst [vmem:[#allocation2 + $0x20] sm:$0x1] %v303_v23 }
  0x1b   : > { %307 = vst [vmem:[#allocation2 + $0x2c] sm:$0x1] %v306_v24  ;;  %v309_v27 = vsel %vm3659_vm5, 0, %v308_v25  ;;  %v312_v28 = vsel %vm3659_vm5, 0, %v311_v26  ;;  %v314_v29 = vld [vmem:[#allocation2 + $0x50] sm:$0x1] }
  0x1c   : > { %v317_v30 = vld [vmem:[#allocation2 + $0x5c] sm:$0x1]  ;;  %310 = vst [vmem:[#allocation2 + $0x38] sm:$0x1] %v309_v27  ;;  %313 = vst [vmem:[#allocation2 + $0x44] sm:$0x1] %v312_v28 }
  0x1d   : > { %v315_v31 = vsel %vm3659_vm5, 0, %v314_v29  ;;  %v318_v32 = vsel %vm3659_vm5, 0, %v317_v30  ;;  %v320_v33 = vld [vmem:[#allocation2 + $0x68] sm:$0x1]  ;;  %v264_v34 = vld [vmem:[#allocation2] sm:$0x1] }
  0x1e   : > { %316 = vst [vmem:[#allocation2 + $0x50] sm:$0x1] %v315_v31  ;;  %319 = vst [vmem:[#allocation2 + $0x5c] sm:$0x1] %v318_v32  ;;  %v321_v35 = vsel %vm3659_vm5, 0, %v320_v33  ;;  %v265_v36 = vsel %vm3645_vm3, 0, %v264_v34 }
  0x1f   : > { %v291_v37 = vld [vmem:[#allocation2 + $0x6c] sm:$0x1]  ;;  %v296_v38 = vld [vmem:[#allocation2 + $0x8] sm:$0x1]  ;;  %322 = vst [vmem:[#allocation2 + $0x68] sm:$0x1] %v321_v35 }
  0x20   : > { %266 = vst [vmem:[#allocation2] sm:$0x1] %v265_v36  ;;  %v292_v39 = vsel %vm3645_vm3, 0, %v291_v37  ;;  %v297_v40 = vsel %vm3659_vm5, 0, %v296_v38  ;;  %v323_v41 = vld [vmem:[#allocation2 + $0x74] sm:$0x1] }
  0x21   : > { %293 = vst [vmem:[#allocation2 + $0x6c] sm:$0x1] %v292_v39  ;;  %298 = vst [vmem:[#allocation2 + $0x8] sm:$0x1] %v297_v40  ;;  %v324_v42 = vsel %vm3659_vm5, 0, %v323_v41  ;;  %s3014_s30 = sshll.u32 %s4425_s19, 5 }
  0x22   : > { %325 = vst [vmem:[#allocation2 + $0x74] sm:$0x1] %v324_v42  ;;  %s243_s7 = scalar_select %p242_p6, %s3701_s26, 15  ;;  %vm408_vm6 = vsmask.f32 4368  ;;  %v328_v43 = vld [vmem:[%s3715_s8] sm:$0xff] }
  0x23   : > { %v329_v44 = vld [vmem:[%s3715_s8 + $0x8] sm:$0xff]  ;;  %v330_v45 = vld [vmem:[%s3715_s8 + $0x10] sm:$0xff]  ;;  %v344_v46 = vmax.f32 %v328_v43, 0.0  ;;  %v331_v49 = vld [vmem:[%s3715_s8 + $0x18] sm:$0xff]  ;;  %s3035_s15 = sadd.s32 (!%p3034_p7), 4294967295, %s3701_s26 }
  0x24   : > { %s3013_s9 = sshll.u32 %s243_s7, 1  ;;  %v345_v47 = vmax.f32 %v329_v44, 0.0  ;;  %v346_v48 = vmax.f32 %v330_v45, 0.0  ;;  %v332_v50 = vld [vmem:[%s3715_s8 + $0x20] sm:$0xff]  ;;  %v333_v51 = vld [vmem:[%s3715_s8 + $0x28] sm:$0xff]  ;;  %v347_v52 = vmax.f32 %v331_v49, 0.0  ;;  %vm3732_vm7 = vmor %vm262_vm2, %vm408_vm6 }
  0x25   : > { %s246_s10 = sadd.s32 %s3014_s30, %s3013_s9  ;;  %v348_v53 = vmax.f32 %v332_v50, 0.0  ;;  %v349_v54 = vmax.f32 %v333_v51, 0.0  ;;  %v334_v55 = vld [vmem:[%s3715_s8 + $0x30] sm:$0xff]  ;;  %v335_v56 = vld [vmem:[%s3715_s8 + $0x38] sm:$0xff]  ;;  %v3180_v57 = vpack.c.bf16 %v344_v46, %v344_v46  ;;  %v573_v12 = vld [vmem:[#allocation2 + $0xc] sm:$0xf] }
  0x26   : > { %s3015_s11 = sshll.u32 %s246_s10, 3  ;;  %v3181_v58 = vpack.c.bf16 %v345_v47, %v345_v47  ;;  %v3182_v59 = vpack.c.bf16 %v346_v48, %v346_v48  ;;  %v350_v60 = vmax.f32 %v334_v55, 0.0  ;;  %v3183_v61 = vpack.c.bf16 %v347_v52, %v347_v52  ;;  %v577_v17 = vld [vmem:[#allocation2 + $0x14] sm:$0x1]  ;;  %v580_v26 = vld [vmem:[#allocation2 + $0x18] sm:$0xf] }
  0x27   : > { %s3728_s14 = scalar_lea.vmem %s4401_s5, %s3015_s11  ;;  %v3184_v62 = vpack.c.bf16 %v348_v53, %v348_v53  ;;  %v3185_v63 = vpack.c.bf16 %v349_v54, %v349_v54  ;;  %v351_v0 = vmax.f32 %v335_v56, 0.0  ;;  %v411_v2 = vshrl.u32 %v3180_v57, 16  ;;  %v584_v27 = vld [vmem:[#allocation2 + $0x20] sm:$0x1]  ;;  %v337_v37 = vld [vmem:[%s3715_s8 + $0x48] sm:$0xff]  ;;  %v338_v52 = vld [vmem:[%s3715_s8 + $0x50] sm:$0xff] }
  0x28   : > { %v414_v3 = vshll.u32 %v3180_v57, 16  ;;  %v419_v4 = vshrl.u32 %v3181_v58, 16  ;;  %v422_v5 = vshll.u32 %v3181_v58, 16  ;;  %v428_v6 = vshrl.u32 %v3182_v59, 16  ;;  %v336_v36 = vld [vmem:[%s3715_s8 + $0x40] sm:$0xff]  ;;  %v339_v57 = vld [vmem:[%s3715_s8 + $0x58] sm:$0xff] }
  0x29   : > { %v431_v7 = vshll.u32 %v3182_v59, 16  ;;  %v436_v8 = vshrl.u32 %v3183_v61, 16  ;;  %v439_v9 = vshll.u32 %v3183_v61, 16  ;;  %v413_v11 = vrot.slane %v411_v2, 7  ;;  %v587_v41 = vld [vmem:[#allocation2 + $0x24] sm:$0xf] }
  0x2a   : > { %v421_v13 = vrot.slane %v419_v4, 7  ;;  %v445_v14 = vshrl.u32 %v3184_v62, 16  ;;  %v448_v15 = vshll.u32 %v3184_v62, 16  ;;  %v430_v18 = vrot.slane %v428_v6, 7  ;;  %v591_v45 = vld [vmem:[#allocation2 + $0x2c] sm:$0x1] }
  0x2b   : > { %v438_v19 = vrot.slane %v436_v8, 7  ;;  %v453_v20 = vshrl.u32 %v3185_v63, 16  ;;  %v456_v21 = vshll.u32 %v3185_v63, 16  ;;  %v416_v22 = vor.u32 %v414_v3, %v413_v11  ;;  %v340_v58 = vld [vmem:[%s3715_s8 + $0x60] sm:$0xff]  ;;  %s3036_s16 = sshll.u32 (!%p3034_p7), %s3035_s15, 4 }
  0x2c   : > { %v417_v23 = vrot.slane %v413_v11, 4  ;;  %v424_v24 = vor.u32 %v422_v5, %v421_v13  ;;  %v426_v25 = vrot.slane %v421_v13, 4  ;;  %v433_v28 = vor.u32 %v431_v7, %v430_v18  ;;  %v598_v5 = vld [vmem:[#allocation2 + $0x38] sm:$0x1]  ;;  %s635_s17 = scalar_lea.vmem (!%p3034_p7), %s3708_s29, %s3036_s16 }
  0x2d   : > { %v434_v29 = vrot.slane %v430_v18, 4  ;;  %v441_v30 = vor.u32 %v439_v9, %v438_v19  ;;  %v443_v31 = vrot.slane %v438_v19, 4  ;;  %v574_v32 = vsel %vm3738_vm8, %v416_v22, %v573_v12 }
  0x2e   : > { %v425_v33 = vsel %vm3732_vm7, %v417_v23, %v424_v24  ;;  %v578_v34 = vsel %vm3645_vm3, %v426_v25, %v577_v17  ;;  %v447_v35 = vrot.slane %v445_v14, 7  ;;  %575 = vst [vmem:[#allocation2 + $0xc] sm:$0xf] %v574_v32  ;;  %v581_v38 = vsel %vm3738_vm8, %v433_v28, %v580_v26  ;;  %v601_v23 = vld [vmem:[#allocation2 + $0x3c] sm:$0xf] }
  0x2f   : > { %576 = vst.msk [vmem:[#allocation2 + $0x10] sm:$0xf] %vm252_vm0, %v425_v33  ;;  %579 = vst [vmem:[#allocation2 + $0x14] sm:$0x1] %v578_v34  ;;  %v442_v39 = vsel %vm3732_vm7, %v434_v29, %v441_v30  ;;  %v585_v40 = vsel %vm3645_vm3, %v443_v31, %v584_v27  ;;  %v455_v42 = vrot.slane %v453_v20, 7  ;;  %v3186_v46 = vpack.c.bf16 %v350_v60, %v350_v60  ;;  %v341_v29 = vld [vmem:[%s3715_s8 + $0x68] sm:$0xff] }
  0x30   : > { %582 = vst [vmem:[#allocation2 + $0x18] sm:$0xf] %v581_v38  ;;  %583 = vst.msk [vmem:[#allocation2 + $0x1c] sm:$0xf] %vm252_vm0, %v442_v39  ;;  %v450_v43 = vor.u32 %v448_v15, %v447_v35  ;;  %v451_v44 = vrot.slane %v447_v35, 4  ;;  %v3187_v47 = vpack.c.bf16 %v351_v0, %v351_v0  ;;  %v352_v50 = vmax.f32 %v336_v36, 0.0 }
  0x31   : > { %586 = vst [vmem:[#allocation2 + $0x20] sm:$0x1] %v585_v40  ;;  %v458_v48 = vor.u32 %v456_v21, %v455_v42  ;;  %v460_v49 = vrot.slane %v455_v42, 4  ;;  %v353_v51 = vmax.f32 %v337_v37, 0.0  ;;  %v462_v54 = vshrl.u32 %v3186_v46, 16 }
  0x32   : > { %v588_v53 = vsel %vm3738_vm8, %v450_v43, %v587_v41  ;;  %v465_v55 = vshll.u32 %v3186_v46, 16  ;;  %v470_v56 = vshrl.u32 %v3187_v47, 16  ;;  %v473_v61 = vshll.u32 %v3187_v47, 16  ;;  %v594_v0 = vld [vmem:[#allocation2 + $0x30] sm:$0xf] }
  0x33   : > { %589 = vst [vmem:[#allocation2 + $0x24] sm:$0xf] %v588_v53  ;;  %v459_v59 = vsel %vm3732_vm7, %v451_v44, %v458_v48  ;;  %v592_v60 = vsel %vm3645_vm3, %v460_v49, %v591_v45  ;;  %v3188_v62 = vpack.c.bf16 %v352_v50, %v352_v50  ;;  %v464_v63 = vrot.slane %v462_v54, 7  ;;  %v605_v30 = vld [vmem:[#allocation2 + $0x44] sm:$0x1]  ;;  %v342_v44 = vld [vmem:[%s3715_s8 + $0x70] sm:$0xff] }
  0x34   : > { %590 = vst.msk [vmem:[#allocation2 + $0x28] sm:$0xf] %vm252_vm0, %v459_v59  ;;  %593 = vst [vmem:[#allocation2 + $0x2c] sm:$0x1] %v592_v60  ;;  %v472_v2 = vrot.slane %v470_v56, 7  ;;  %v3189_v3 = vpack.c.bf16 %v353_v51, %v353_v51  ;;  %v354_v4 = vmax.f32 %v338_v52, 0.0 }
  0x35   : > { %v479_v6 = vshrl.u32 %v3188_v62, 16  ;;  %v482_v7 = vshll.u32 %v3188_v62, 16  ;;  %v355_v8 = vmax.f32 %v339_v57, 0.0  ;;  %v356_v9 = vmax.f32 %v340_v58, 0.0  ;;  %v608_v39 = vld [vmem:[#allocation2 + $0x48] sm:$0xf] }
  0x36   : > { %v467_v11 = vor.u32 %v465_v55, %v464_v63  ;;  %v468_v12 = vrot.slane %v464_v63, 4  ;;  %v475_v13 = vor.u32 %v473_v61, %v472_v2  ;;  %v477_v14 = vrot.slane %v472_v2, 4  ;;  %v343_v45 = vld [vmem:[%s3715_s8 + $0x78] sm:$0xff]  ;;  %v612_v50 = vld [vmem:[#allocation2 + $0x50] sm:$0x1] }
  0x37   : > { %v481_v15 = vrot.slane %v479_v6, 7  ;;  %v487_v17 = vshrl.u32 %v3189_v3, 16  ;;  %v490_v18 = vshll.u32 %v3189_v3, 16  ;;  %v3190_v19 = vpack.c.bf16 %v354_v4, %v354_v4  ;;  %v615_v56 = vld [vmem:[#allocation2 + $0x54] sm:$0xf] }
  0x38   : > { %v595_v20 = vsel %vm3738_vm8, %v467_v11, %v594_v0  ;;  %v476_v21 = vsel %vm3732_vm7, %v468_v12, %v475_v13  ;;  %v599_v22 = vsel %vm3645_vm3, %v477_v14, %v598_v5  ;;  %v3191_v24 = vpack.c.bf16 %v355_v8, %v355_v8 }
  0x39   : > { %596 = vst [vmem:[#allocation2 + $0x30] sm:$0xf] %v595_v20  ;;  %597 = vst.msk [vmem:[#allocation2 + $0x34] sm:$0xf] %vm252_vm0, %v476_v21  ;;  %v484_v25 = vor.u32 %v482_v7, %v481_v15  ;;  %v485_v26 = vrot.slane %v481_v15, 4  ;;  %v489_v27 = vrot.slane %v487_v17, 7  ;;  %v3192_v34 = vpack.c.bf16 %v356_v9, %v356_v9 }
  0x3a   : > { %600 = vst [vmem:[#allocation2 + $0x38] sm:$0x1] %v599_v22  ;;  %v496_v28 = vshrl.u32 %v3190_v19, 16  ;;  %v499_v31 = vshll.u32 %v3190_v19, 16  ;;  %v504_v32 = vshrl.u32 %v3191_v24, 16  ;;  %v507_v33 = vshll.u32 %v3191_v24, 16 }
  0x3b   : > { %v602_v35 = vsel %vm3738_vm8, %v484_v25, %v601_v23  ;;  %v492_v36 = vor.u32 %v490_v18, %v489_v27  ;;  %v494_v37 = vrot.slane %v489_v27, 4  ;;  %v513_v41 = vshrl.u32 %v3192_v34, 16  ;;  %v619_v9 = vld [vmem:[#allocation2 + $0x5c] sm:$0x1]  ;;  %v622_v17 = vld [vmem:[#allocation2 + $0x60] sm:$0xf] }
  0x3c   : > { %v498_v38 = vrot.slane %v496_v28, 7  ;;  %603 = vst [vmem:[#allocation2 + $0x3c] sm:$0xf] %v602_v35  ;;  %v506_v40 = vrot.slane %v504_v32, 7  ;;  %v516_v42 = vshll.u32 %v3192_v34, 16  ;;  %v357_v43 = vmax.f32 %v341_v29, 0.0 }
  0x3d   : > { %v493_v46 = vsel %vm3732_vm7, %v485_v26, %v492_v36  ;;  %v606_v47 = vsel %vm3645_vm3, %v494_v37, %v605_v30  ;;  %v515_v53 = vrot.slane %v513_v41, 7  ;;  %v358_v57 = vmax.f32 %v342_v44, 0.0  ;;  %v626_v22 = vld [vmem:[#allocation2 + $0x68] sm:$0x1] }
  0x3e   : > { %v501_v48 = vor.u32 %v499_v31, %v498_v38  ;;  %v502_v49 = vrot.slane %v498_v38, 4  ;;  %604 = vst.msk [vmem:[#allocation2 + $0x40] sm:$0xf] %vm252_vm0, %v493_v46  ;;  %607 = vst [vmem:[#allocation2 + $0x44] sm:$0x1] %v606_v47  ;;  %v509_v51 = vor.u32 %v507_v33, %v506_v40  ;;  %v511_v52 = vrot.slane %v506_v40, 4 }
  0x3f   : > { %v3193_v54 = vpack.c.bf16 %v357_v43, %v357_v43  ;;  %v359_v58 = vmax.f32 %v343_v45, 0.0  ;;  %v518_v61 = vor.u32 %v516_v42, %v515_v53  ;;  %v3194_v0 = vpack.c.bf16 %v358_v57, %v358_v57 }
  0x40   : > { %v609_v55 = vsel %vm3738_vm8, %v501_v48, %v608_v39  ;;  %v510_v59 = vsel %vm3732_vm7, %v502_v49, %v509_v51  ;;  %v613_v60 = vsel %vm3645_vm3, %v511_v52, %v612_v50  ;;  %v519_v4 = vrot.slane %v515_v53, 4 }
  0x41   : > { %610 = vst [vmem:[#allocation2 + $0x48] sm:$0xf] %v609_v55  ;;  %611 = vst.msk [vmem:[#allocation2 + $0x4c] sm:$0xf] %vm252_vm0, %v510_v59  ;;  %v521_v62 = vshrl.u32 %v3193_v54, 16  ;;  %v524_v63 = vshll.u32 %v3193_v54, 16  ;;  %v3195_v2 = vpack.c.bf16 %v359_v58, %v359_v58  ;;  %v616_v3 = vsel %vm3738_vm8, %v518_v61, %v615_v56 }
  0x42   : > { %614 = vst [vmem:[#allocation2 + $0x50] sm:$0x1] %v613_v60  ;;  %617 = vst [vmem:[#allocation2 + $0x54] sm:$0xf] %v616_v3  ;;  %v530_v6 = vshrl.u32 %v3194_v0, 16  ;;  %v533_v7 = vshll.u32 %v3194_v0, 16 }
  0x43   : > { %v523_v5 = vrot.slane %v521_v62, 7  ;;  %v538_v8 = vshrl.u32 %v3195_v2, 16  ;;  %v541_v11 = vshll.u32 %v3195_v2, 16 }
  0x44   : > { %v532_v14 = vrot.slane %v530_v6, 7 }
  0x45   : > { %v526_v12 = vor.u32 %v524_v63, %v523_v5  ;;  %v528_v13 = vrot.slane %v523_v5, 4  ;;  %v540_v15 = vrot.slane %v538_v8, 7 }
  0x46   : > { %v535_v20 = vor.u32 %v533_v7, %v532_v14  ;;  %v536_v21 = vrot.slane %v532_v14, 4  ;;  %632 = sbr.rel (%p3034_p7) target bundleno = 89 (0x59), region = 44 }
  0x47   : > { %v527_v18 = vsel %vm3732_vm7, %v519_v4, %v526_v12  ;;  %v620_v19 = vsel %vm3645_vm3, %v528_v13, %v619_v9  ;;  %v543_v23 = vor.u32 %v541_v11, %v540_v15  ;;  %v545_v24 = vrot.slane %v540_v15, 4 }
  0x48   : > { %618 = vst.msk [vmem:[#allocation2 + $0x58] sm:$0xf] %vm252_vm0, %v527_v18  ;;  %621 = vst [vmem:[#allocation2 + $0x5c] sm:$0x1] %v620_v19  ;;  %v623_v25 = vsel %vm3738_vm8, %v535_v20, %v622_v17 }
  0x49   : > { %624 = vst [vmem:[#allocation2 + $0x60] sm:$0xf] %v623_v25  ;;  %v544_v26 = vsel %vm3732_vm7, %v536_v21, %v543_v23  ;;  %v627_v27 = vsel %vm3645_vm3, %v545_v24, %v626_v22 }
  0x4a   : > { %625 = vst.msk [vmem:[#allocation2 + $0x64] sm:$0xf] %vm252_vm0, %v544_v26  ;;  %628 = vst [vmem:[#allocation2 + $0x68] sm:$0x1] %v627_v27 }
  0x4b   : > { %v636_v28 = vld [vmem:[%s635_s17] sm:$0xff]  ;;  %v637_v29 = vld [vmem:[%s635_s17 + $0x8] sm:$0xff] }
  0x4c   : > { %v638_v30 = vmax.f32 %v636_v28, 0.0  ;;  %v639_v31 = vmax.f32 %v637_v29, 0.0  ;;  %v666_v40 = vld [vmem:[#allocation2] sm:$0xf]  ;;  %v670_v41 = vld [vmem:[#allocation2 + $0x8] sm:$0x1] }
  0x4e   : > { %v3196_v32 = vpack.c.bf16 %v638_v30, %v638_v30  ;;  %v3197_v33 = vpack.c.bf16 %v639_v31, %v639_v31 }
  0x50   : > { %v647_v34 = vshrl.u32 %v3196_v32, 16  ;;  %v650_v35 = vshll.u32 %v3196_v32, 16  ;;  %v655_v36 = vshrl.u32 %v3197_v33, 16  ;;  %v658_v37 = vshll.u32 %v3197_v33, 16 }
  0x52   : > { %v649_v38 = vrot.slane %v647_v34, 7  ;;  %v657_v39 = vrot.slane %v655_v36, 7 }
  0x54   : > { %v652_v42 = vor.u32 %v650_v35, %v649_v38  ;;  %v653_v43 = vrot.slane %v649_v38, 4  ;;  %v660_v44 = vor.u32 %v658_v37, %v657_v39  ;;  %v662_v45 = vrot.slane %v657_v39, 4 }
  0x56   : > { %v667_v46 = vsel %vm3738_vm8, %v652_v42, %v666_v40  ;;  %v661_v47 = vsel %vm3732_vm7, %v653_v43, %v660_v44  ;;  %v671_v48 = vsel %vm3645_vm3, %v662_v45, %v670_v41 }
  0x57   : > { %668 = vst [vmem:[#allocation2] sm:$0xf] %v667_v46  ;;  %669 = vst.msk [vmem:[#allocation2 + $0x4] sm:$0xf] %vm252_vm0, %v661_v47 }
  0x58   : > { %672 = vst [vmem:[#allocation2 + $0x8] sm:$0x1] %v671_v48 }
  0x59 PF: > { %p3039_p8 = scmp.ge.s32.totalorder %s3554_s18, 1 }
  0x5b   : > { %676 = sbr.rel (%p3039_p8) target bundleno = 110 (0x6e), region = 48 }
  0x60   : > { %v3042_v49 = vld [vmem:[%s3715_s8 + $0x80] sm:$0xff]  ;;  %v3043_v50 = vld [vmem:[%s3715_s8 + $0x88] sm:$0xff]  ;;  %v714_v62 = vld [vmem:[#allocation2 + $0x74] sm:$0x1] }
  0x61   : > { %v682_v51 = vmax.f32 %v3042_v49, 0.0  ;;  %v683_v52 = vmax.f32 %v3043_v50, 0.0  ;;  %v710_v61 = vld [vmem:[#allocation2 + $0x6c] sm:$0xf] }
  0x63   : > { %v3199_v53 = vpack.c.bf16 %v682_v51, %v682_v51  ;;  %v3200_v54 = vpack.c.bf16 %v683_v52, %v683_v52 }
  0x65   : > { %v691_v55 = vshrl.u32 %v3199_v53, 16  ;;  %v694_v56 = vshll.u32 %v3199_v53, 16  ;;  %v699_v57 = vshrl.u32 %v3200_v54, 16  ;;  %v702_v58 = vshll.u32 %v3200_v54, 16 }
  0x67   : > { %v693_v59 = vrot.slane %v691_v55, 7  ;;  %v701_v60 = vrot.slane %v699_v57, 7 }
  0x69   : > { %v696_v63 = vor.u32 %v694_v56, %v693_v59  ;;  %v697_v0 = vrot.slane %v693_v59, 4  ;;  %v704_v2 = vor.u32 %v702_v58, %v701_v60  ;;  %v706_v3 = vrot.slane %v701_v60, 4 }
  0x6b   : > { %v711_v4 = vsel %vm3738_vm8, %v696_v63, %v710_v61  ;;  %v705_v5 = vsel %vm3732_vm7, %v697_v0, %v704_v2  ;;  %v715_v6 = vsel %vm3645_vm3, %v706_v3, %v714_v62 }
  0x6c   : > { %712 = vst [vmem:[#allocation2 + $0x6c] sm:$0xf] %v711_v4  ;;  %713 = vst.msk [vmem:[#allocation2 + $0x70] sm:$0xf] %vm252_vm0, %v705_v5 }
  0x6d   : > { %716 = vst [vmem:[#allocation2 + $0x74] sm:$0x1] %v715_v6 }
  0x6e PF: > { %v737_v7 = vld [vmem:[%s4397_s1] sm:$0x3]  ;;  %vm803_vm9 = vcmask 1041408   ;;  %vm778_vm10 = vcmask 31744   ;;  %v3523_v1 = vld [vmem:[#allocation2 + $0xc] sm:$0xff]   ;;  %v3840_v12 = vld [vmem:[#allocation2 + $0x18] sm:$0xff]  }
  0x6f   : > { %v3522_v8 = vld [vmem:[#allocation2] sm:$0xff]   ;;  %3471 = vmatprep.subr.msk.bf16.mxu0 %vm803_vm9, %v737_v7  ;;  %v805_v16 = vsel %vm803_vm9, %v737_v7, 0  ;;  %v3072_v10 = vld [vmem:[%s4397_s1 + $0xc] sm:$0x3]  ;;  %3311 = vmatprep.mubr.msk.bf16.mxu1 %vm778_vm10, %v3523_v1  ;;  %v3859_v18 = vld [vmem:[#allocation2 + $0x30] sm:$0xff]   ;;  %vm2080_vm14 = vcmask 1042432  }
  0x70   : > { %3292 = vmatpush3.bf16.msra.mxu0 %v805_v16  ;;  %3293 = vmatprep.mubr.msk.bf16.mxu0 %vm778_vm10, %v3522_v8  ;;  %v1090_v9 = vsel %vm803_vm9, %v3072_v10, 0  ;;  %v3062_v11 = vld [vmem:[%s4397_s1 + $0x6] sm:$0x3]  ;;  %v3082_v15 = vld [vmem:[%s4397_s1 + $0x2] sm:$0x3]  ;;  %v3876_v37 = vld [vmem:[#allocation2 + $0x48] sm:$0xff]  }
  0x71   : > { %3473 = vmatprep.subr.msk.bf16.mxu0 %vm803_vm9, %v3072_v10  ;;  %3472 = vmatprep.subr.msk.bf16.mxu1 %vm803_vm9, %v3062_v11  ;;  %v932_v13 = vsel %vm803_vm9, %v3062_v11, 0  ;;  %v3848_v14 = vld [vmem:[#allocation2 + $0x24] sm:$0xff]   ;;  %v1561_v17 = vsel %vm803_vm9, %v3082_v15, 0  ;;  %v1237_v20 = vld [vmem:[#allocation2] sm:$0xf]  ;;  %v3906_v6 = vld [vmem:[#allocation2 + $0x54] sm:$0xff]  }
  0x72   : > { %3310 = vmatpush3.bf16.msra.mxu1 %v932_v13  ;;  %v3864_v19 = vld [vmem:[%s4397_s1 + $0x8] sm:$0x3]  ;;  %v1238_v21 = vld [vmem:[#allocation2 + $0x4] sm:$0xf]  ;;  %v3870_v23 = vld [vmem:[#allocation2 + $0x3c] sm:$0xff]   ;;  %v1271_v24 = vshrl.u32 %v1237_v20, 16 }
  0x73   : > { %3294 = vmatmul.mubr.msk.bf16.vlgmr.msra.gmra.mxu0 %vm778_vm10, %v3523_v1  ;;  %3474 = vmatprep.subr.msk.bf16.mxu1 %vm803_vm9, %v3082_v15  ;;  %v1239_v22 = vld [vmem:[#allocation2 + $0x8] sm:$0x1]  ;;  %v1274_v25 = vshll.u32 %v1237_v20, 16  ;;  %v1280_v26 = vshll.u32 %v1238_v21, 16  ;;  %v1284_v27 = vshrl.u32 %v1238_v21, 16  ;;  %vm2081_vm15 = vcmask 1046532  }
  0x74   : > { %3328 = vmatpush3.bf16.msra.mxu0 %v1090_v9  ;;  %3297 = vmatprep.mubr.msk.bf16.mxu0 %vm778_vm10, %v3840_v12  ;;  %v1240_v28 = vld [vmem:[#allocation2 + $0xc] sm:$0xf]  ;;  %vm1267_vm11 = vsmask.f32 3328  ;;  %v1290_v29 = vshll.u32 %v1239_v22, 16  ;;  %v1273_v32 = vrot.slane %v1271_v24, 4  ;;  %vm4048_vm0 = vmor %vm2080_vm14, %vm2081_vm15 }
  0x75   : > { %3312 = vmatmul.mubr.msk.bf16.vlgmr.msra.gmra.mxu1 %vm778_vm10, %v3840_v12  ;;  %3475 = vmatprep.subr.msk.bf16.mxu0 %vm803_vm9, %v3864_v19  ;;  %v1241_v30 = vld [vmem:[#allocation2 + $0x10] sm:$0xf]  ;;  %v1295_v31 = vshrl.u32 %v1240_v28, 16  ;;  %v1276_v33 = vrot.slane %v1274_v25, 5  ;;  %v1282_v34 = vrot.slane %v1280_v26, 5  ;;  %v1286_v35 = vrot.slane %v1284_v27, 4 }
  0x76   : > { %3315 = vmatprep.mubr.msk.bf16.mxu1 %vm778_vm10, %v3848_v14  ;;  %3346 = vmatpush3.bf16.msra.mxu1 %v1561_v17  ;;  %v1243_v36 = vld [vmem:[#allocation2 + $0x18] sm:$0xf]  ;;  %vm1268_vm12 = vsmask.f32 7440  ;;  %v1292_v38 = vrot.slane %v1290_v29, 5  ;;  %v1298_v39 = vshll.u32 %v1240_v28, 16 }
  0x77   : > { %v1304_v40 = vshll.u32 %v1241_v30, 16  ;;  %v1277_v41 = vor.u32 %v1276_v33, %v1273_v32  ;;  %v1287_v42 = vor.u32 %v1286_v35, %v1282_v34  ;;  %v1242_v43 = vld [vmem:[#allocation2 + $0x14] sm:$0x1]  ;;  %v1297_v44 = vrot.slane %v1295_v31, 4  ;;  %v1244_v46 = vld [vmem:[#allocation2 + $0x1c] sm:$0xf]  ;;  %vm3884_vm13 = vmor %vm1267_vm11, %vm1268_vm12 }
  0x78   : > { %v1308_v45 = vshrl.u32 %v1241_v30, 16  ;;  %v1300_v47 = vrot.slane %v1298_v39, 5  ;;  %v1245_v49 = vld [vmem:[#allocation2 + $0x20] sm:$0x1]  ;;  %v1319_v50 = vshrl.u32 %v1243_v36, 16  ;;  %v1322_v51 = vshll.u32 %v1243_v36, 16 }
  0x79   : > { %v3880_v48 = vrot.slane %v1304_v40, 5  ;;  %v1246_v52 = vld [vmem:[#allocation2 + $0x24] sm:$0xf]  ;;  %v1278_v54 = vrot.slane %v1277_v41, 4  ;;  %v1288_v55 = vrot.slane %v1287_v42, 4  ;;  %v1314_v58 = vshll.u32 %v1242_v43, 16 }
  0x7a   : > { %v1310_v56 = vrot.slane %v1308_v45, 4  ;;  %v1247_v57 = vld [vmem:[#allocation2 + $0x28] sm:$0xf]  ;;  %v1321_v59 = vrot.slane %v1319_v50, 4  ;;  %v1324_v60 = vrot.slane %v1322_v51, 5  ;;  %v1328_v61 = vshll.u32 %v1244_v46, 16 }
  0x7b   : > { %3298 = vmatmul.mubr.msk.bf16.gmra.mxu0 %vm778_vm10, %v3848_v14  ;;  %v3891_v62 = vld [vmem:[%s4397_s1 + $0xe] sm:$0x3]  ;;  %v1301_v63 = vor.u32 %v1300_v47, %v1297_v44  ;;  %v1332_v2 = vshrl.u32 %v1244_v46, 16  ;;  %v1283_v3 = vsel %vm3884_vm13, %v1278_v54, %v1282_v34  ;;  %v1293_v4 = vsel %vm3884_vm13, %v1288_v55, %v1292_v38  ;;  %v1249_v20 = vld [vmem:[#allocation2 + $0x30] sm:$0xf]  ;;  %v3915_v31 = vld [vmem:[#allocation2 + $0x60] sm:$0xff]  }
  0x7c   : > { %3301 = vmatprep.mubr.msk.bf16.mxu0 %vm778_vm10, %v3859_v18  ;;  %v1311_v0 = vor.u32 %v1310_v56, %v3880_v48  ;;  %3476 = vmatprep.subr.msk.bf16.mxu1 %vm803_vm9, %v3891_v62  ;;  %v3904_v5 = vrot.slane %v1328_v61, 5  ;;  %v1325_v7 = vor.u32 %v1324_v60, %v1321_v59  ;;  %v1338_v16 = vshll.u32 %v1245_v49, 16  ;;  %v1250_v21 = vld [vmem:[#allocation2 + $0x34] sm:$0xf]  ;;  %v1248_v28 = vld [vmem:[#allocation2 + $0x2c] sm:$0x1] }
  0x7d   : > { %3316 = vmatmul.mubr.msk.bf16.gmra.mxu1 %vm778_vm10, %v3859_v18  ;;  %v1334_v8 = vrot.slane %v1332_v2, 4  ;;  %v1343_v1 = vshrl.u32 %v1246_v52, 16  ;;  %v1316_v10 = vrot.slane %v1314_v58, 5  ;;  %v1346_v9 = vshll.u32 %v1246_v52, 16  ;;  %v1251_v40 = vld [vmem:[#allocation2 + $0x38] sm:$0x1] }
  0x7e   : > { %3319 = vmatprep.mubr.msk.bf16.mxu1 %vm778_vm10, %v3870_v23  ;;  %v1352_v11 = vshll.u32 %v1247_v57, 16  ;;  %v1302_v13 = vrot.slane %v1301_v63, 4  ;;  %v1312_v15 = vrot.slane %v1311_v0, 4  ;;  %v3083_v22 = vcombine.low %v1283_v3, %v1293_v4  ;;  %v1252_v42 = vld [vmem:[#allocation2 + $0x3c] sm:$0xf] }
  0x7f   : > { %v1335_v17 = vor.u32 %v1334_v8, %v3904_v5  ;;  %v1345_v24 = vrot.slane %v1343_v1, 4  ;;  %v1348_v25 = vrot.slane %v1346_v9, 5  ;;  %v1326_v26 = vrot.slane %v1325_v7, 4  ;;  %v1253_v47 = vld [vmem:[#allocation2 + $0x40] sm:$0xf] }
  0x80   : > { %v1340_v27 = vrot.slane %v1338_v16, 5  ;;  %v3913_v29 = vrot.slane %v1352_v11, 5  ;;  %v1356_v30 = vshrl.u32 %v1247_v57, 16  ;;  %v1367_v33 = vshrl.u32 %v1249_v20, 16  ;;  %v1255_v0 = vld [vmem:[#allocation2 + $0x48] sm:$0xf] }
  0x81   : > { %v1336_v32 = vrot.slane %v1335_v17, 4  ;;  %v1370_v34 = vshll.u32 %v1249_v20, 16  ;;  %v1376_v35 = vshll.u32 %v1250_v21, 16  ;;  %v1307_v36 = vsel %vm3884_vm13, %v1302_v13, %v3880_v48  ;;  %v1254_v7 = vld [vmem:[#allocation2 + $0x44] sm:$0x1] }
  0x82   : > { %v1317_v38 = vsel %vm3884_vm13, %v1312_v15, %v1316_v10  ;;  %v1358_v39 = vrot.slane %v1356_v30, 4  ;;  %v1380_v41 = vshrl.u32 %v1250_v21, 16  ;;  %v1349_v43 = vor.u32 %v1348_v25, %v1345_v24  ;;  %v1256_v8 = vld [vmem:[#allocation2 + $0x4c] sm:$0xf]  ;;  %v3949_v11 = vld [vmem:[%s4397_s1 + $0x4] sm:$0x3] }
  0x83   : > { %3302 = vmatmul.mubr.msk.bf16.gmra.mxu0 %vm778_vm10, %v3870_v23  ;;  %v1362_v44 = vshll.u32 %v1248_v28, 16  ;;  %v1369_v45 = vrot.slane %v1367_v33, 4  ;;  %v1372_v46 = vrot.slane %v1370_v34, 5  ;;  %v1331_v49 = vsel %vm3884_vm13, %v1326_v26, %v3904_v5  ;;  %v1257_v15 = vld [vmem:[#allocation2 + $0x50] sm:$0x1] }
  0x84   : > { %3305 = vmatprep.mubr.msk.bf16.mxu0 %vm778_vm10, %v3876_v37  ;;  %v1359_v48 = vor.u32 %v1358_v39, %v3913_v29  ;;  %v3930_v50 = vrot.slane %v1376_v35, 5  ;;  %v1382_v51 = vrot.slane %v1380_v41, 4  ;;  %v1391_v54 = vshrl.u32 %v1252_v42, 16  ;;  %v1258_v25 = vld [vmem:[#allocation2 + $0x54] sm:$0xf] }
  0x85   : > { %3320 = vmatmul.mubr.msk.bf16.gmra.mxu1 %vm778_vm10, %v3876_v37  ;;  %v1373_v52 = vor.u32 %v1372_v46, %v1369_v45  ;;  %v1394_v55 = vshll.u32 %v1252_v42, 16  ;;  %v1386_v57 = vshll.u32 %v1251_v40, 16  ;;  %v1400_v58 = vshll.u32 %v1253_v47, 16  ;;  %v1259_v26 = vld [vmem:[#allocation2 + $0x58] sm:$0xf] }
  0x86   : > { %3323 = vmatprep.mubr.msk.bf16.mxu1 %vm778_vm10, %v3906_v6  ;;  %v1383_v56 = vor.u32 %v1382_v51, %v3930_v50  ;;  %v1350_v59 = vrot.slane %v1349_v43, 4  ;;  %v1360_v60 = vrot.slane %v1359_v48, 4  ;;  %v1364_v61 = vrot.slane %v1362_v44, 5 }
  0x87   : > { %v1404_v63 = vshrl.u32 %v1253_v47, 16  ;;  %v1717_v2 = vsel %vm803_vm9, %v3864_v19, 0  ;;  %v3940_v3 = vcombine.low %v1307_v36, %v1317_v38  ;;  %v1374_v5 = vrot.slane %v1373_v52, 4 }
  0x88   : > { %v1393_v16 = vrot.slane %v1391_v54, 4  ;;  %v1396_v1 = vrot.slane %v1394_v55, 5  ;;  %v3944_v10 = vrot.slane %v1400_v58, 5  ;;  %v1384_v19 = vrot.slane %v1383_v56, 4 }
  0x89   : > { %v1406_v9 = vrot.slane %v1404_v63, 4  ;;  %v1388_v13 = vrot.slane %v1386_v57, 5  ;;  %v1415_v17 = vshrl.u32 %v1255_v0, 16  ;;  %v1418_v20 = vshll.u32 %v1255_v0, 16  ;;  %v1260_v57 = vld [vmem:[#allocation2 + $0x5c] sm:$0x1] }
  0x8a   : > { %v1355_v21 = vsel %vm3884_vm13, %v1350_v59, %v3913_v29  ;;  %v1873_v24 = vsel %vm803_vm9, %v3891_v62, 0  ;;  %v3967_v29 = vld [vmem:[%s4397_s1 + $0xa] sm:$0x3]  ;;  %v1379_v62 = vsel %vm3884_vm13, %v1374_v5, %v3930_v50  ;;  %v1434_v38 = vshll.u32 %v1257_v15, 16 }
  0x8b   : > { %3306 = vmatmul.mubr.msk.bf16.gmra.mxu0 %vm778_vm10, %v3906_v6  ;;  %v1417_v28 = vrot.slane %v1415_v17, 4  ;;  %v1420_v30 = vrot.slane %v1418_v20, 5  ;;  %v1407_v33 = vor.u32 %v1406_v9, %v3944_v10  ;;  %v1389_v35 = vsel %vm3884_vm13, %v1384_v19, %v1388_v13  ;;  %v1262_v9 = vld [vmem:[#allocation2 + $0x64] sm:$0xf] }
  0x8c   : > { %3329 = vmatprep.mubr.msk.bf16.mxu0 %vm778_vm10, %v3840_v12  ;;  %v1341_v12 = vsel %vm3884_vm13, %v1336_v32, %v1340_v27  ;;  %v1410_v27 = vshll.u32 %v1254_v7, 16  ;;  %v1397_v32 = vor.u32 %v1396_v1, %v1393_v16  ;;  %v1439_v39 = vshrl.u32 %v1258_v25, 16  ;;  %v3531_v16 = vld [vmem:[#allocation2 + $0x6c] sm:$0xff]  }
  0x8d   : > { %3324 = vmatmul.mubr.msk.bf16.gmra.mxu1 %vm778_vm10, %v3915_v31  ;;  %v3942_v4 = vcombine.low %v1331_v49, %v1341_v12  ;;  %v1421_v40 = vor.u32 %v1420_v30, %v1417_v28  ;;  %v1442_v41 = vshll.u32 %v1258_v25, 16  ;;  %v1448_v42 = vshll.u32 %v1259_v26, 16 }
  0x8e   : > { %3347 = vmatprep.mubr.msk.bf16.mxu1 %vm778_vm10, %v3083_v22  ;;  %v1365_v22 = vsel %vm3884_vm13, %v1360_v60, %v1364_v61  ;;  %v1452_v43 = vshrl.u32 %v1259_v26, 16  ;;  %v3981_v46 = vcombine.low %v1379_v62, %v1389_v35  ;;  %v1398_v47 = vrot.slane %v1397_v32, 4 }
  0x8f   : > { %v3086_v44 = vcombine.low %v1355_v21, %v1365_v22  ;;  %v1408_v49 = vrot.slane %v1407_v33, 4  ;;  %v1412_v48 = vrot.slane %v1410_v27, 5  ;;  %v1441_v50 = vrot.slane %v1439_v39, 4  ;;  %v4026_v21 = vld [vmem:[%s4397_s1 + $0x10] sm:$0x3] }
  0x90   : > { %v1444_v51 = vrot.slane %v1442_v41, 5  ;;  %v1450_v12 = vrot.slane %v1448_v42, 5  ;;  %v1454_v52 = vrot.slane %v1452_v43, 4  ;;  %v1422_v54 = vrot.slane %v1421_v40, 4  ;;  %v1264_v22 = vld [vmem:[#allocation2 + $0x6c] sm:$0xf] }
  0x91   : > { %v1436_v56 = vrot.slane %v1434_v38, 5  ;;  %v1403_v58 = vsel %vm3884_vm13, %v1398_v47, %v3944_v10  ;;  %v1458_v61 = vshll.u32 %v1260_v57, 16  ;;  %v2204_v19 = vsel %vm803_vm9, %v3949_v11, 0  ;;  %v2021_v33 = vld [vmem:[#allocation2 + $0x4] sm:$0xf] }
  0x92   : > { %v1445_v59 = vor.u32 %v1444_v51, %v1441_v50  ;;  %v1455_v60 = vor.u32 %v1454_v52, %v1450_v12  ;;  %v1472_v17 = vshll.u32 %v1262_v9, 16  ;;  %v1476_v20 = vshrl.u32 %v1262_v9, 16  ;;  %v1266_v39 = vld [vmem:[#allocation2 + $0x74] sm:$0x1]  ;;  %v2020_v40 = vld [vmem:[#allocation2] sm:$0xe] }
  0x93   : > { %3330 = vmatmul.mubr.msk.bf16.vlgmr.msra.gmra.mxu0 %vm778_vm10, %v3848_v14  ;;  %v1424_v14 = vshll.u32 %v1256_v8, 16  ;;  %v1487_v27 = vshrl.u32 %v1264_v22, 16  ;;  %v1490_v28 = vshll.u32 %v1264_v22, 16  ;;  %v2085_v41 = vrot.slane %v2021_v33, 5  ;;  %v2030_v9 = vld [vmem:[#allocation2 + $0x28] sm:$0xf] }
  0x94   : > { %3364 = vmatpush3.bf16.msra.mxu0 %v1717_v2  ;;  %3333 = vmatprep.mubr.msk.bf16.mxu0 %vm778_vm10, %v3859_v18  ;;  %v1428_v18 = vshrl.u32 %v1256_v8, 16  ;;  %v1446_v5 = vrot.slane %v1445_v59, 4  ;;  %v1456_v7 = vrot.slane %v1455_v60, 4  ;;  %v1460_v8 = vrot.slane %v1458_v61, 5 }
  0x95   : > { %3477 = vmatprep.subr.msk.bf16.mxu0 %vm803_vm9, %v3949_v11  ;;  %3348 = vmatmul.mubr.msk.bf16.vlgmr.msra.gmra.mxu1 %vm778_vm10, %v3940_v3  ;;  %v1426_v34 = vrot.slane %v1424_v14, 5  ;;  %v1265_v11 = vld [vmem:[#allocation2 + $0x70] sm:$0xf]  ;;  %v1474_v25 = vrot.slane %v1472_v17, 5  ;;  %v1478_v26 = vrot.slane %v1476_v20, 4  ;;  %v1492_v35 = vrot.slane %v1490_v28, 5 }
  0x96   : > { %3351 = vmatprep.mubr.msk.bf16.mxu1 %vm778_vm10, %v3942_v4  ;;  %3382 = vmatpush3.bf16.msra.mxu1 %v1873_v24  ;;  %v1430_v36 = vrot.slane %v1428_v18, 4  ;;  %v1451_v1 = vsel %vm3884_vm13, %v1446_v5, %v1450_v12  ;;  %v1496_v30 = vshll.u32 %v1265_v11, 16  ;;  %v1500_v18 = vshrl.u32 %v1265_v11, 16  ;;  %v2026_v5 = vld [vmem:[#allocation2 + $0x18] sm:$0xe] }
  0x97   : > { %3478 = vmatprep.subr.msk.bf16.mxu1 %vm803_vm9, %v3967_v29  ;;  %v1479_v62 = vor.u32 %v1478_v26, %v1474_v25  ;;  %v3119_v50 = vrot.slane %v2020_v40, 9  ;;  %v2087_v51 = vrot.slane %v2085_v41, 4  ;;  %v2106_v22 = vrot.slane %v2030_v9, 5  ;;  %v2033_v11 = vld [vmem:[#allocation2 + $0x34] sm:$0xf] }
  0x98   : > { %v1431_v45 = vor.u32 %v1430_v36, %v1426_v34  ;;  %v1498_v36 = vrot.slane %v1496_v30, 5  ;;  %v1502_v38 = vrot.slane %v1500_v18, 4  ;;  %v2516_v33 = vsel %vm803_vm9, %v4026_v21, 0 }
  0x99   : > { %v1480_v43 = vrot.slane %v1479_v62, 4  ;;  %v2108_v30 = vrot.slane %v2106_v22, 4  ;;  %v2036_v62 = vld [vmem:[#allocation2 + $0x40] sm:$0xf]  ;;  %vm2758_vm1 = vcmask 1043456   ;;  %vm904_vm2 = vcmask 64512  }
  0x9a   : > { %v1432_v55 = vrot.slane %v1431_v45, 4  ;;  %v2022_v45 = vld [vmem:[#allocation2 + $0x8] sm:$0x1]  ;;  %v2120_v40 = vrot.slane %v2036_v62, 5 }
  0x9b   : > { %3334 = vmatmul.mubr.msk.bf16.gmra.mxu0 %vm778_vm10, %v3870_v23  ;;  %v1413_v23 = vsel %vm3884_vm13, %v1408_v49, %v1412_v48  ;;  %v1503_v49 = vor.u32 %v1502_v38, %v1498_v36  ;;  %v1506_v48 = vshll.u32 %v1266_v39, 16  ;;  %v2088_v12 = vrot.slane %v2022_v45, 5 }
  0x9c   : > { %3337 = vmatprep.mubr.msk.bf16.mxu0 %vm778_vm10, %v3876_v37  ;;  %v1427_v37 = vsel %vm3884_vm13, %v1422_v54, %v1426_v34  ;;  %v1437_v63 = vsel %vm3884_vm13, %v1432_v55, %v1436_v56  ;;  %v3088_v0 = vcombine.low %v1403_v58, %v1413_v23  ;;  %v1489_v34 = vrot.slane %v1487_v27, 4  ;;  %v2023_v56 = vld [vmem:[#allocation2 + $0xc] sm:$0xe]  ;;  %v2027_v58 = vld [vmem:[#allocation2 + $0x1c] sm:$0xf] }
  0x9d   : > { %3352 = vmatmul.mubr.msk.bf16.gmra.mxu1 %vm778_vm10, %v3086_v44  ;;  %v4001_v2 = vcombine.low %v1427_v37, %v1437_v63  ;;  %v2025_v23 = vld [vmem:[#allocation2 + $0x14] sm:$0x1]  ;;  %v1504_v60 = vrot.slane %v1503_v49, 4  ;;  %v1508_v61 = vrot.slane %v1506_v48, 5  ;;  %v2086_v63 = vsel %vm4048_vm0, %v3119_v50, %v2085_v41  ;;  %v2039_v41 = vld [vmem:[#allocation2 + $0x4c] sm:$0xf] }
  0x9e   : > { %3355 = vmatprep.mubr.msk.bf16.mxu1 %vm778_vm10, %v3981_v46  ;;  %v1493_v47 = vor.u32 %v1492_v35, %v1489_v34  ;;  %v2113_v27 = vrot.slane %v2033_v11, 5  ;;  %v2122_v48 = vrot.slane %v2120_v40, 4  ;;  %v2048_v11 = vld [vmem:[#allocation2 + $0x70] sm:$0xf] }
  0xa0   : > { %v1494_v59 = vrot.slane %v1493_v47, 4  ;;  %v2115_v35 = vrot.slane %v2113_v27, 4  ;;  %v2127_v47 = vrot.slane %v2039_v41, 5 }
  0xa3   : > { %3338 = vmatmul.mubr.msk.bf16.gmra.mxu0 %vm778_vm10, %v3906_v6  ;;  %v1461_v6 = vsel %vm3884_vm13, %v1456_v7, %v1460_v8  ;;  %v2099_v7 = vrot.slane %v2027_v58, 5 }
  0xa4   : > { %3341 = vmatprep.mubr.msk.bf16.mxu0 %vm778_vm10, %v3915_v31  ;;  %v4012_v10 = vcombine.low %v1451_v1, %v1461_v6  ;;  %v1261_v31 = vld [vmem:[#allocation2 + $0x60] sm:$0xf]  ;;  %v1499_v6 = vsel %vm3884_vm13, %v1494_v59, %v1498_v36 }
  0xa5   : > { %3356 = vmatmul.mubr.msk.bf16.gmra.mxu1 %vm778_vm10, %v3088_v0  ;;  %v1463_v13 = vshrl.u32 %v1261_v31, 16  ;;  %v1466_v15 = vshll.u32 %v1261_v31, 16  ;;  %v2028_v1 = vld [vmem:[#allocation2 + $0x20] sm:$0x1]  ;;  %v1509_v31 = vsel %vm3884_vm13, %v1504_v60, %v1508_v61  ;;  %v2041_v60 = vld [vmem:[#allocation2 + $0x54] sm:$0xe] }
  0xa6   : > { %3359 = vmatprep.mubr.msk.bf16.mxu1 %vm778_vm10, %v4001_v2  ;;  %v2102_v17 = vrot.slane %v2028_v1, 5  ;;  %v2043_v61 = vld [vmem:[#allocation2 + $0x5c] sm:$0x1] }
  0xa7   : > { %v1465_v24 = vrot.slane %v1463_v13, 4  ;;  %v1468_v14 = vrot.slane %v1466_v15, 5  ;;  %v3121_v13 = vrot.slane %v2026_v5, 9  ;;  %v2101_v15 = vrot.slane %v2099_v7, 4 }
  0xa9   : > { %v2103_v26 = vsel %vm4048_vm0, %v2101_v15, %v2102_v17 }
  0xab   : > { %3342 = vmatmul.mubr.msk.bf16.gmra.mxu0 %vm778_vm10, %v3531_v16  ;;  %v2095_v16 = vrot.slane %v2025_v23, 5 }
  0xac   : > { %3365 = vmatprep.mubr.msk.bf16.mxu0 %vm778_vm10, %v3940_v3  ;;  %v2360_v3 = vsel %vm803_vm9, %v3967_v29, 0  ;;  %v1469_v29 = vor.u32 %v1468_v14, %v1465_v24  ;;  %v2029_v24 = vld [vmem:[#allocation2 + $0x24] sm:$0xe]  ;;  %v2031_v14 = vld [vmem:[#allocation2 + $0x2c] sm:$0x1] }
  0xad   : > { %3360 = vmatmul.mubr.msk.bf16.gmra.mxu1 %vm778_vm10, %v4012_v10  ;;  %v3122_v28 = vrot.slane %v2029_v24, 9  ;;  %v2109_v18 = vrot.slane %v2031_v14, 5  ;;  %v2148_v24 = vrot.slane %v2048_v11, 5  ;;  %v2047_v14 = vld [vmem:[#allocation2 + $0x6c] sm:$0xe] }
  0xae   : > { %3383 = vmatprep.mubr.msk.bf16.mxu1 %vm778_vm10, %v3942_v4  ;;  %v1470_v42 = vrot.slane %v1469_v29, 4  ;;  %v2034_v29 = vld [vmem:[#allocation2 + $0x38] sm:$0x1] }
  0xaf   : > { %v2116_v36 = vrot.slane %v2034_v29, 5  ;;  %v2107_v38 = vsel %vm4048_vm0, %v3122_v28, %v2106_v22  ;;  %v2110_v39 = vsel %vm4048_vm0, %v2108_v30, %v2109_v18  ;;  %v2726_v18 = vld [vmem:[%s4399_s3] sm:$0xf] }
  0xb0   : > { %v1475_v52 = vsel %vm3884_vm13, %v1470_v42, %v1474_v25  ;;  %v2100_v25 = vsel %vm4048_vm0, %v3121_v13, %v2099_v7  ;;  %v2035_v42 = vld [vmem:[#allocation2 + $0x3c] sm:$0xe]  ;;  %v3126_v7 = vrot.slane %v2041_v60, 9  ;;  %v2760_v29 = vsel %vm2758_vm1, %v2726_v18, 0 }
  0xb1   : > { %v2117_v45 = vsel %vm4048_vm0, %v2115_v35, %v2116_v36  ;;  %v3124_v49 = vrot.slane %v2035_v42, 9 }
  0xb3   : > { %3366 = vmatmul.mubr.msk.bf16.vlgmr.msra.gmra.mxu0 %vm778_vm10, %v3942_v4  ;;  %v1263_v4 = vld [vmem:[#allocation2 + $0x68] sm:$0x1]  ;;  %v2121_v58 = vsel %vm4048_vm0, %v3124_v49, %v2120_v40 }
  0xb4   : > { %3400 = vmatpush3.bf16.msra.mxu0 %v2204_v19  ;;  %3369 = vmatprep.mubr.msk.bf16.mxu0 %vm778_vm10, %v3086_v44  ;;  %v1482_v32 = vshll.u32 %v1263_v4, 16  ;;  %v2032_v4 = vld [vmem:[#allocation2 + $0x30] sm:$0xe] }
  0xb5   : > { %3479 = vmatprep.subr.msk.bf16.mxu0 %vm803_vm9, %v4026_v21  ;;  %3384 = vmatmul.mubr.msk.bf16.vlgmr.msra.gmra.mxu1 %vm778_vm10, %v3086_v44  ;;  %v3123_v34 = vrot.slane %v2032_v4, 9  ;;  %v3133_v21 = vcombine.low %v2107_v38, %v2110_v39 }
  0xb6   : > { %3387 = vmatprep.mubr.msk.bf16.mxu1 %vm778_vm10, %v3981_v46  ;;  %3418 = vmatpush3.bf16.msra.mxu1 %v2360_v3  ;;  %v1484_v44 = vrot.slane %v1482_v32, 5  ;;  %v3110_v3 = vcombine.low %v1499_v6, %v1509_v31  ;;  %v4079_v32 = vcombine.low %v2100_v25, %v2103_v26  ;;  %v2044_v6 = vld [vmem:[#allocation2 + $0x60] sm:$0xe]  ;;  %v2046_v31 = vld [vmem:[#allocation2 + $0x68] sm:$0x1]  ;;  %v3128_v25 = vrot.slane %v2047_v14, 9 }
  0xb7   : > { %v3127_v13 = vrot.slane %v2044_v6, 9  ;;  %v2144_v17 = vrot.slane %v2046_v31, 5  ;;  %v2150_v26 = vrot.slane %v2148_v24, 4  ;;  %3480 = vmatprep.subr.msk.bf16.mxu1 %vm2758_vm1, %v2726_v18 }
  0xb8   : > { %v1485_v54 = vsel %vm3884_vm13, %v1480_v43, %v1484_v44  ;;  %v2037_v43 = vld [vmem:[#allocation2 + $0x44] sm:$0x1]  ;;  %v2114_v44 = vsel %vm4048_vm0, %v3123_v34, %v2113_v27  ;;  %v2149_v27 = vsel %vm4048_vm0, %v3128_v25, %v2148_v24 }
  0xb9   : > { %v3100_v37 = vcombine.low %v1475_v52, %v1485_v54  ;;  %v2123_v50 = vrot.slane %v2037_v43, 5  ;;  %v3134_v52 = vcombine.low %v2114_v44, %v2117_v45 }
  0xbb   : > { %3370 = vmatmul.mubr.msk.bf16.gmra.mxu0 %vm778_vm10, %v3981_v46  ;;  %v2024_v46 = vld [vmem:[#allocation2 + $0x10] sm:$0xf]  ;;  %v2124_v23 = vsel %vm4048_vm0, %v2122_v48, %v2123_v50 }
  0xbc   : > { %3373 = vmatprep.mubr.msk.bf16.mxu0 %vm778_vm10, %v3088_v0  ;;  %v2092_v57 = vrot.slane %v2024_v46, 5  ;;  %v2038_v46 = vld [vmem:[#allocation2 + $0x48] sm:$0xe] }
  0xbd   : > { %3388 = vmatmul.mubr.msk.bf16.gmra.mxu1 %vm778_vm10, %v3088_v0  ;;  %v2089_v0 = vsel %vm4048_vm0, %v2087_v51, %v2088_v12  ;;  %v2040_v51 = vld [vmem:[#allocation2 + $0x50] sm:$0x1]  ;;  %v2042_v12 = vld [vmem:[#allocation2 + $0x58] sm:$0xf]  ;;  %v3125_v54 = vrot.slane %v2038_v46, 9 }
  0xbe   : > { %3391 = vmatprep.mubr.msk.bf16.mxu1 %vm778_vm10, %v4001_v2  ;;  %v2094_v8 = vrot.slane %v2092_v57, 4  ;;  %v3130_v19 = vcombine.low %v2086_v63, %v2089_v0  ;;  %v2134_v59 = vrot.slane %v2042_v12, 5  ;;  %v3135_v63 = vcombine.low %v2121_v58, %v2124_v23 }
  0xbf   : > { %v2128_v0 = vsel %vm4048_vm0, %v3125_v54, %v2127_v47 }
  0xc0   : > { %v2096_v20 = vsel %vm4048_vm0, %v2094_v8, %v2095_v16  ;;  %v2137_v8 = vrot.slane %v2043_v61, 5  ;;  %v2135_v9 = vsel %vm4048_vm0, %v3126_v7, %v2134_v59 }
  0xc3   : > { %3374 = vmatmul.mubr.msk.bf16.gmra.mxu0 %vm778_vm10, %v4001_v2  ;;  %v3120_v2 = vrot.slane %v2023_v56, 9  ;;  %v2129_v56 = vrot.slane %v2127_v47, 4 }
  0xc4   : > { %3377 = vmatprep.mubr.msk.bf16.mxu0 %vm778_vm10, %v4012_v10 }
  0xc5   : > { %3392 = vmatmul.mubr.msk.bf16.gmra.mxu1 %vm778_vm10, %v4012_v10  ;;  %v2093_v10 = vsel %vm4048_vm0, %v3120_v2, %v2092_v57  ;;  %v2130_v57 = vrot.slane %v2040_v51, 5  ;;  %v2136_v2 = vrot.slane %v2134_v59, 4 }
  0xc6   : > { %3395 = vmatprep.mubr.msk.bf16.mxu1 %vm778_vm10, %v3100_v37  ;;  %v3131_v53 = vcombine.low %v2093_v10, %v2096_v20 }
  0xc7   : > { %v2131_v5 = vsel %vm4048_vm0, %v2129_v56, %v2130_v57 }
  0xc8   : > { %v3136_v1 = vcombine.low %v2128_v0, %v2131_v5 }
  0xcb   : > { %3378 = vmatmul.mubr.msk.bf16.gmra.mxu0 %vm778_vm10, %v3100_v37  ;;  %v2045_v37 = vld [vmem:[#allocation2 + $0x64] sm:$0xf] }
  0xcc   : > { %3401 = vmatprep.mubr.msk.bf16.mxu0 %vm778_vm10, %v3130_v19  ;;  %v2141_v16 = vrot.slane %v2045_v37, 5  ;;  %v2138_v19 = vsel %vm4048_vm0, %v2136_v2, %v2137_v8 }
  0xcd   : > { %3396 = vmatmul.mubr.msk.bf16.gmra.mxu1 %vm778_vm10, %v3110_v3  ;;  %v3137_v10 = vcombine.low %v2135_v9, %v2138_v19 }
  0xce   : > { %3419 = vmatprep.mubr.msk.bf16.mxu1 %vm778_vm10, %v3131_v53  ;;  %v2143_v15 = vrot.slane %v2141_v16, 4  ;;  %v2142_v20 = vsel %vm4048_vm0, %v3127_v13, %v2141_v16 }
  0xd0   : > { %v2145_v3 = vsel %vm4048_vm0, %v2143_v15, %v2144_v17 }
  0xd1   : > { %v3147_v22 = vcombine.low %v2142_v20, %v2145_v3 }
  0xd3   : > { %3402 = vmatmul.mubr.msk.bf16.vlgmr.msra.gmra.mxu0 %vm778_vm10, %v3131_v53  ;;  %v2049_v53 = vld [vmem:[#allocation2 + $0x74] sm:$0x1] }
  0xd4   : > { %3436 = vmatpush3.bf16.msra.mxu0 %v2516_v33  ;;  %3405 = vmatprep.mubr.msk.bf16.mxu0 %vm778_vm10, %v4079_v32  ;;  %v2151_v4 = vrot.slane %v2049_v53, 5 }
  0xd5   : > { %3420 = vmatmul.mubr.msk.bf16.vlgmr.msra.gmra.mxu1 %vm778_vm10, %v4079_v32 }
  0xd6   : > { %3423 = vmatprep.mubr.msk.bf16.mxu1 %vm778_vm10, %v3133_v21  ;;  %v2152_v28 = vsel %vm4048_vm0, %v2150_v26, %v2151_v4  ;;  %3454 = vmatpush3.bf16.msra.mxu1 %v2760_v29 }
  0xd7   : > { %v3157_v30 = vcombine.low %v2149_v27, %v2152_v28 }
  0xdb   : > { %3406 = vmatmul.mubr.msk.bf16.gmra.mxu0 %vm778_vm10, %v3133_v21 }
  0xdc   : > { %3409 = vmatprep.mubr.msk.bf16.mxu0 %vm778_vm10, %v3134_v52 }
  0xdd   : > { %3424 = vmatmul.mubr.msk.bf16.gmra.mxu1 %vm778_vm10, %v3134_v52 }
  0xde   : > { %3427 = vmatprep.mubr.msk.bf16.mxu1 %vm778_vm10, %v3135_v63 }
  0xe3   : > { %3410 = vmatmul.mubr.msk.bf16.gmra.mxu0 %vm778_vm10, %v3135_v63 }
  0xe4   : > { %3413 = vmatprep.mubr.msk.bf16.mxu0 %vm778_vm10, %v3136_v1 }
  0xe5   : > { %3428 = vmatmul.mubr.msk.bf16.gmra.mxu1 %vm778_vm10, %v3136_v1 }
  0xe6   : > { %3431 = vmatprep.mubr.msk.bf16.mxu1 %vm778_vm10, %v3137_v10 }
  0xeb   : > { %3414 = vmatmul.mubr.msk.bf16.gmra.mxu0 %vm778_vm10, %v3137_v10 }
  0xec   : > { %3437 = vmatprep.mubr.msk.bf16.mxu0 %vm778_vm10, %v4079_v32 }
  0xed   : > { %3432 = vmatmul.mubr.msk.bf16.gmra.mxu1 %vm778_vm10, %v3147_v22 }
  0xf3   : > { %3438 = vmatmul.mubr.msk.bf16.vlgmr.msra.gmra.mxu0 %vm778_vm10, %v3133_v21 }
  0xf4   : > { %3441 = vmatprep.mubr.msk.bf16.mxu0 %vm778_vm10, %v3134_v52 }
  0xfb   : > { %3442 = vmatmul.mubr.msk.bf16.gmra.mxu0 %vm778_vm10, %v3135_v63 }
  0xfc   : > { %3445 = vmatprep.mubr.msk.bf16.mxu0 %vm778_vm10, %v3136_v1 }
 0x103   : > { %3446 = vmatmul.mubr.msk.bf16.gmra.mxu0 %vm778_vm10, %v3137_v10 }
 0x104   : > { %3449 = vmatprep.mubr.msk.bf16.mxu0 %vm778_vm10, %v3147_v22 }
 0x10b   : > { %3450 = vmatmul.mubr.msk.bf16.gmra.mxu0 %vm778_vm10, %v3157_v30 }
 0x133   : > { %v3295_v62 = vpop.f32.mrf.mxu0 }
 0x134   : > { %907 = vst.msk [vmem:[#allocation3 + $0x10] sm:$0xff] %vm904_vm2, %v3295_v62 }
 0x135   : > { %v841_v32 = vpop.f32.mrf.mxu0  ;;  %v3313_v55 = vpop.f32.mrf.mxu1 }
 0x136   : > { %905 = vst.msk [vmem:[#allocation3] sm:$0xff] %vm904_vm2, %v841_v32 }
 0x137   : > { %v3296_v33 = vpop.f32.mrf.mxu0  ;;  %v968_v34 = vpop.f32.mrf.mxu1 }
 0x138   : > { %908 = vst.msk [vmem:[#allocation3 + $0x18] sm:$0xff] %vm904_vm2, %v3296_v33 }
 0x139   : > { %v844_v35 = vpop.f32.mrf.mxu0  ;;  %v3314_v36 = vpop.f32.mrf.mxu1 }
 0x13a   : > { %906 = vst.msk [vmem:[#allocation3 + $0x8] sm:$0xff] %vm904_vm2, %v844_v35 }
 0x13b   : > { %v3299_v38 = vpop.f32.mrf.mxu0  ;;  %v1033_v39 = vld [vmem:[#allocation3 + $0x10] sm:$0xff]  ;;  %v971_v41 = vpop.f32.mrf.mxu1 }
 0x13c   : > { %911 = vst.msk [vmem:[#allocation3 + $0x30] sm:$0xff] %vm904_vm2, %v3299_v38  ;;  %v1049_v40 = vadd.f32 %v3313_v55, %v1033_v39 }
 0x13d   : > { %v857_v42 = vpop.f32.mrf.mxu0  ;;  %v1031_v43 = vld [vmem:[#allocation3] sm:$0xff]  ;;  %v3317_v44 = vpop.f32.mrf.mxu1 }
 0x13e   : > { %1065 = vst.msk [vmem:[#allocation3 + $0x10] sm:$0xff] %vm904_vm2, %v1049_v40  ;;  %909 = vst.msk [vmem:[#allocation3 + $0x20] sm:$0xff] %vm904_vm2, %v857_v42  ;;  %v1047_v21 = vadd.f32 %v1031_v43, %v968_v34 }
 0x13f   : > { %v3300_v45 = vpop.f32.mrf.mxu0  ;;  %v1034_v46 = vld [vmem:[#allocation3 + $0x18] sm:$0xff]  ;;  %v984_v49 = vpop.f32.mrf.mxu1 }
 0x140   : > { %1063 = vst.msk [vmem:[#allocation3] sm:$0xff] %vm904_vm2, %v1047_v21  ;;  %912 = vst.msk [vmem:[#allocation3 + $0x38] sm:$0xff] %vm904_vm2, %v3300_v45  ;;  %v1050_v47 = vadd.f32 %v3314_v36, %v1034_v46 }
 0x141   : > { %v860_v48 = vpop.f32.mrf.mxu0  ;;  %v1032_v50 = vld [vmem:[#allocation3 + $0x8] sm:$0xff]  ;;  %v3318_v12 = vpop.f32.mrf.mxu1 }
 0x142   : > { %1066 = vst.msk [vmem:[#allocation3 + $0x18] sm:$0xff] %vm904_vm2, %v1050_v47  ;;  %910 = vst.msk [vmem:[#allocation3 + $0x28] sm:$0xff] %vm904_vm2, %v860_v48  ;;  %v1048_v51 = vadd.f32 %v1032_v50, %v971_v41 }
 0x143   : > { %v3303_v52 = vpop.f32.mrf.mxu0  ;;  %v1037_v54 = vld [vmem:[#allocation3 + $0x30] sm:$0xff]  ;;  %v987_v57 = vpop.f32.mrf.mxu1 }
 0x144   : > { %1064 = vst.msk [vmem:[#allocation3 + $0x8] sm:$0xff] %vm904_vm2, %v1048_v51  ;;  %915 = vst.msk [vmem:[#allocation3 + $0x50] sm:$0xff] %vm904_vm2, %v3303_v52  ;;  %v1053_v56 = vadd.f32 %v3317_v44, %v1037_v54 }
 0x145   : > { %v873_v58 = vpop.f32.mrf.mxu0  ;;  %v1035_v23 = vld [vmem:[#allocation3 + $0x20] sm:$0xff]  ;;  %v3321_v60 = vpop.f32.mrf.mxu1  ;;  %v1191_v26 = vld [vmem:[#allocation3 + $0x10] sm:$0xff] }
 0x146   : > { %1069 = vst.msk [vmem:[#allocation3 + $0x30] sm:$0xff] %vm904_vm2, %v1053_v56  ;;  %913 = vst.msk [vmem:[#allocation3 + $0x40] sm:$0xff] %vm904_vm2, %v873_v58  ;;  %v1051_v59 = vadd.f32 %v1035_v23, %v984_v49 }
 0x147   : > { %v3304_v61 = vpop.f32.mrf.mxu0  ;;  %v1038_v37 = vld [vmem:[#allocation3 + $0x38] sm:$0xff]  ;;  %v1000_v0 = vpop.f32.mrf.mxu1  ;;  %v1189_v29 = vld [vmem:[#allocation3] sm:$0xff] }
 0x148   : > { %1067 = vst.msk [vmem:[#allocation3 + $0x20] sm:$0xff] %vm904_vm2, %v1051_v59  ;;  %916 = vst.msk [vmem:[#allocation3 + $0x58] sm:$0xff] %vm904_vm2, %v3304_v61  ;;  %v1054_v63 = vadd.f32 %v3318_v12, %v1038_v37 }
 0x149   : > { %v876_v5 = vpop.f32.mrf.mxu0  ;;  %v1036_v7 = vld [vmem:[#allocation3 + $0x28] sm:$0xff]  ;;  %v3322_v8 = vpop.f32.mrf.mxu1  ;;  %v1192_v35 = vld [vmem:[#allocation3 + $0x18] sm:$0xff] }
 0x14a   : > { %1070 = vst.msk [vmem:[#allocation3 + $0x38] sm:$0xff] %vm904_vm2, %v1054_v63  ;;  %914 = vst.msk [vmem:[#allocation3 + $0x48] sm:$0xff] %vm904_vm2, %v876_v5  ;;  %v1052_v2 = vadd.f32 %v1036_v7, %v987_v57 }
 0x14b   : > { %v3307_v16 = vpop.f32.mrf.mxu0  ;;  %v1041_v1 = vld [vmem:[#allocation3 + $0x50] sm:$0xff]  ;;  %v1003_v31 = vpop.f32.mrf.mxu1  ;;  %v1190_v42 = vld [vmem:[#allocation3 + $0x8] sm:$0xff] }
 0x14c   : > { %1068 = vst.msk [vmem:[#allocation3 + $0x28] sm:$0xff] %vm904_vm2, %v1052_v2  ;;  %919 = vst.msk [vmem:[#allocation3 + $0x70] sm:$0xff] %vm904_vm2, %v3307_v16  ;;  %v1057_v6 = vadd.f32 %v3321_v60, %v1041_v1 }
 0x14d   : > { %v889_v9 = vpop.f32.mrf.mxu0  ;;  %v1039_v19 = vld [vmem:[#allocation3 + $0x40] sm:$0xff]  ;;  %v3325_v15 = vpop.f32.mrf.mxu1  ;;  %v1195_v46 = vld [vmem:[#allocation3 + $0x30] sm:$0xff] }
 0x14e   : > { %1073 = vst.msk [vmem:[#allocation3 + $0x50] sm:$0xff] %vm904_vm2, %v1057_v6  ;;  %917 = vst.msk [vmem:[#allocation3 + $0x60] sm:$0xff] %vm904_vm2, %v889_v9  ;;  %v1055_v13 = vadd.f32 %v1039_v19, %v1000_v0 }
 0x14f   : > { %v3308_v17 = vpop.f32.mrf.mxu0  ;;  %v1042_v10 = vld [vmem:[#allocation3 + $0x58] sm:$0xff]  ;;  %v1016_v3 = vpop.f32.mrf.mxu1  ;;  %v1193_v50 = vld [vmem:[#allocation3 + $0x20] sm:$0xff] }
 0x150   : > { %1071 = vst.msk [vmem:[#allocation3 + $0x40] sm:$0xff] %vm904_vm2, %v1055_v13  ;;  %920 = vst.msk [vmem:[#allocation3 + $0x78] sm:$0xff] %vm904_vm2, %v3308_v17  ;;  %v1058_v20 = vadd.f32 %v3322_v8, %v1042_v10 }
 0x151   : > { %v892_v22 = vpop.f32.mrf.mxu0  ;;  %v1040_v11 = vld [vmem:[#allocation3 + $0x48] sm:$0xff]  ;;  %v3326_v14 = vpop.f32.mrf.mxu1  ;;  %v1196_v57 = vld [vmem:[#allocation3 + $0x38] sm:$0xff] }
 0x152   : > { %1074 = vst.msk [vmem:[#allocation3 + $0x58] sm:$0xff] %vm904_vm2, %v1058_v20  ;;  %918 = vst.msk [vmem:[#allocation3 + $0x68] sm:$0xff] %vm904_vm2, %v892_v22  ;;  %v1056_v24 = vadd.f32 %v1040_v11, %v1003_v31 }
 0x153   : > { %v1045_v53 = vld [vmem:[#allocation3 + $0x70] sm:$0xff]  ;;  %v3331_v25 = vpop.f32.mrf.mxu0  ;;  %v1019_v28 = vpop.f32.mrf.mxu1  ;;  %v1194_v37 = vld [vmem:[#allocation3 + $0x28] sm:$0xff] }
 0x154   : > { %1072 = vst.msk [vmem:[#allocation3 + $0x48] sm:$0xff] %vm904_vm2, %v1056_v24  ;;  %v1061_v4 = vadd.f32 %v3325_v15, %v1045_v53  ;;  %v1207_v27 = vadd.f32 %v3331_v25, %v1191_v26 }
 0x155   : > { %v1043_v30 = vld [vmem:[#allocation3 + $0x60] sm:$0xff]  ;;  %v1126_v18 = vpop.f32.mrf.mxu0  ;;  %v3349_v55 = vpop.f32.mrf.mxu1  ;;  %v1199_v8 = vld [vmem:[#allocation3 + $0x50] sm:$0xff] }
 0x156   : > { %1077 = vst.msk [vmem:[#allocation3 + $0x70] sm:$0xff] %vm904_vm2, %v1061_v4  ;;  %1223 = vst.msk [vmem:[#allocation3 + $0x10] sm:$0xff] %vm904_vm2, %v1207_v27  ;;  %v1059_v62 = vadd.f32 %v1043_v30, %v1016_v3  ;;  %v1205_v32 = vadd.f32 %v1189_v29, %v1126_v18 }
 0x157   : > { %v1046_v33 = vld [vmem:[#allocation3 + $0x78] sm:$0xff]  ;;  %v3332_v34 = vpop.f32.mrf.mxu0  ;;  %v1597_v39 = vpop.f32.mrf.mxu1  ;;  %v1197_v19 = vld [vmem:[#allocation3 + $0x40] sm:$0xff] }
 0x158   : > { %1075 = vst.msk [vmem:[#allocation3 + $0x60] sm:$0xff] %vm904_vm2, %v1059_v62  ;;  %1221 = vst.msk [vmem:[#allocation3] sm:$0xff] %vm904_vm2, %v1205_v32  ;;  %v1062_v36 = vadd.f32 %v3326_v14, %v1046_v33  ;;  %v1208_v38 = vadd.f32 %v3332_v34, %v1192_v35 }
 0x159   : > { %v1044_v40 = vld [vmem:[#allocation3 + $0x68] sm:$0xff]  ;;  %v1129_v41 = vpop.f32.mrf.mxu0  ;;  %v3350_v44 = vpop.f32.mrf.mxu1  ;;  %v1200_v3 = vld [vmem:[#allocation3 + $0x58] sm:$0xff] }
 0x15a   : > { %1078 = vst.msk [vmem:[#allocation3 + $0x78] sm:$0xff] %vm904_vm2, %v1062_v36  ;;  %1224 = vst.msk [vmem:[#allocation3 + $0x18] sm:$0xff] %vm904_vm2, %v1208_v38  ;;  %v1060_v43 = vadd.f32 %v1044_v40, %v1019_v28  ;;  %v1206_v21 = vadd.f32 %v1190_v42, %v1129_v41 }
 0x15b   : > { %v3335_v45 = vpop.f32.mrf.mxu0  ;;  %v1600_v49 = vpop.f32.mrf.mxu1  ;;  %v1198_v25 = vld [vmem:[#allocation3 + $0x48] sm:$0xff] }
 0x15c   : > { %1076 = vst.msk [vmem:[#allocation3 + $0x68] sm:$0xff] %vm904_vm2, %v1060_v43  ;;  %1222 = vst.msk [vmem:[#allocation3 + $0x8] sm:$0xff] %vm904_vm2, %v1206_v21  ;;  %v1211_v47 = vadd.f32 %v3335_v45, %v1195_v46 }
 0x15d   : > { %v1142_v48 = vpop.f32.mrf.mxu0  ;;  %v1662_v51 = vld [vmem:[#allocation3 + $0x10] sm:$0xff]  ;;  %v3353_v54 = vpop.f32.mrf.mxu1 }
 0x15e   : > { %1227 = vst.msk [vmem:[#allocation3 + $0x30] sm:$0xff] %vm904_vm2, %v1211_v47  ;;  %v1209_v12 = vadd.f32 %v1193_v50, %v1142_v48  ;;  %v1678_v52 = vadd.f32 %v3349_v55, %v1662_v51  ;;  %v1203_v18 = vld [vmem:[#allocation3 + $0x70] sm:$0xff] }
 0x15f   : > { %v3336_v56 = vpop.f32.mrf.mxu0  ;;  %v1660_v58 = vld [vmem:[#allocation3] sm:$0xff]  ;;  %v1613_v60 = vpop.f32.mrf.mxu1 }
 0x160   : > { %1225 = vst.msk [vmem:[#allocation3 + $0x20] sm:$0xff] %vm904_vm2, %v1209_v12  ;;  %1694 = vst.msk [vmem:[#allocation3 + $0x10] sm:$0xff] %vm904_vm2, %v1678_v52  ;;  %v1212_v23 = vadd.f32 %v3336_v56, %v1196_v57  ;;  %v1676_v59 = vadd.f32 %v1660_v58, %v1597_v39  ;;  %v1201_v34 = vld [vmem:[#allocation3 + $0x60] sm:$0xff] }
 0x161   : > { %v1145_v61 = vpop.f32.mrf.mxu0  ;;  %v1663_v63 = vld [vmem:[#allocation3 + $0x18] sm:$0xff]  ;;  %v3354_v7 = vpop.f32.mrf.mxu1 }
 0x162   : > { %1228 = vst.msk [vmem:[#allocation3 + $0x38] sm:$0xff] %vm904_vm2, %v1212_v23  ;;  %1692 = vst.msk [vmem:[#allocation3] sm:$0xff] %vm904_vm2, %v1676_v59  ;;  %v1210_v0 = vadd.f32 %v1194_v37, %v1145_v61  ;;  %v1679_v5 = vadd.f32 %v3350_v44, %v1663_v63  ;;  %v1204_v41 = vld [vmem:[#allocation3 + $0x78] sm:$0xff] }
 0x163   : > { %v3339_v2 = vpop.f32.mrf.mxu0  ;;  %v1661_v16 = vld [vmem:[#allocation3 + $0x8] sm:$0xff]  ;;  %v1616_v31 = vpop.f32.mrf.mxu1 }
 0x164   : > { %1226 = vst.msk [vmem:[#allocation3 + $0x28] sm:$0xff] %vm904_vm2, %v1210_v0  ;;  %1695 = vst.msk [vmem:[#allocation3 + $0x18] sm:$0xff] %vm904_vm2, %v1679_v5  ;;  %v1215_v1 = vadd.f32 %v3339_v2, %v1199_v8  ;;  %v1677_v6 = vadd.f32 %v1661_v16, %v1600_v49  ;;  %v1202_v46 = vld [vmem:[#allocation3 + $0x68] sm:$0xff] }
 0x165   : > { %v1158_v9 = vpop.f32.mrf.mxu0  ;;  %v1666_v13 = vld [vmem:[#allocation3 + $0x30] sm:$0xff]  ;;  %v3357_v10 = vpop.f32.mrf.mxu1 }
 0x166   : > { %1231 = vst.msk [vmem:[#allocation3 + $0x50] sm:$0xff] %vm904_vm2, %v1215_v1  ;;  %1693 = vst.msk [vmem:[#allocation3 + $0x8] sm:$0xff] %vm904_vm2, %v1677_v6  ;;  %v1213_v15 = vadd.f32 %v1197_v19, %v1158_v9  ;;  %v1682_v17 = vadd.f32 %v3353_v54, %v1666_v13 }
 0x167   : > { %v3340_v20 = vpop.f32.mrf.mxu0  ;;  %v1664_v22 = vld [vmem:[#allocation3 + $0x20] sm:$0xff]  ;;  %v1629_v14 = vpop.f32.mrf.mxu1  ;;  %v1818_v52 = vld [vmem:[#allocation3 + $0x10] sm:$0xff] }
 0x168   : > { %1229 = vst.msk [vmem:[#allocation3 + $0x40] sm:$0xff] %vm904_vm2, %v1213_v15  ;;  %1698 = vst.msk [vmem:[#allocation3 + $0x30] sm:$0xff] %vm904_vm2, %v1682_v17  ;;  %v1216_v11 = vadd.f32 %v3340_v20, %v1200_v3  ;;  %v1680_v24 = vadd.f32 %v1664_v22, %v1613_v60 }
 0x169   : > { %v1161_v53 = vpop.f32.mrf.mxu0  ;;  %v1667_v26 = vld [vmem:[#allocation3 + $0x38] sm:$0xff]  ;;  %v3358_v28 = vpop.f32.mrf.mxu1  ;;  %v1816_v59 = vld [vmem:[#allocation3] sm:$0xff] }
 0x16a   : > { %1232 = vst.msk [vmem:[#allocation3 + $0x58] sm:$0xff] %vm904_vm2, %v1216_v11  ;;  %1696 = vst.msk [vmem:[#allocation3 + $0x20] sm:$0xff] %vm904_vm2, %v1680_v24  ;;  %v1214_v4 = vadd.f32 %v1198_v25, %v1161_v53  ;;  %v1683_v27 = vadd.f32 %v3354_v7, %v1667_v26 }
 0x16b   : > { %v3343_v30 = vpop.f32.mrf.mxu0  ;;  %v1665_v29 = vld [vmem:[#allocation3 + $0x28] sm:$0xff]  ;;  %v1632_v55 = vpop.f32.mrf.mxu1  ;;  %v1819_v5 = vld [vmem:[#allocation3 + $0x18] sm:$0xff] }
 0x16c   : > { %1230 = vst.msk [vmem:[#allocation3 + $0x48] sm:$0xff] %vm904_vm2, %v1214_v4  ;;  %1699 = vst.msk [vmem:[#allocation3 + $0x38] sm:$0xff] %vm904_vm2, %v1683_v27  ;;  %v1219_v62 = vadd.f32 %v3343_v30, %v1203_v18  ;;  %v1681_v32 = vadd.f32 %v1665_v29, %v1616_v31 }
 0x16d   : > { %v1174_v33 = vpop.f32.mrf.mxu0  ;;  %v1670_v35 = vld [vmem:[#allocation3 + $0x50] sm:$0xff]  ;;  %v3361_v39 = vpop.f32.mrf.mxu1  ;;  %v1817_v6 = vld [vmem:[#allocation3 + $0x8] sm:$0xff] }
 0x16e   : > { %1235 = vst.msk [vmem:[#allocation3 + $0x70] sm:$0xff] %vm904_vm2, %v1219_v62  ;;  %1697 = vst.msk [vmem:[#allocation3 + $0x28] sm:$0xff] %vm904_vm2, %v1681_v32  ;;  %v1217_v36 = vadd.f32 %v1201_v34, %v1174_v33  ;;  %v1686_v38 = vadd.f32 %v3357_v10, %v1670_v35 }
 0x16f   : > { %v3344_v40 = vpop.f32.mrf.mxu0  ;;  %v1668_v42 = vld [vmem:[#allocation3 + $0x40] sm:$0xff]  ;;  %v1645_v44 = vpop.f32.mrf.mxu1  ;;  %v1822_v17 = vld [vmem:[#allocation3 + $0x30] sm:$0xff] }
 0x170   : > { %1233 = vst.msk [vmem:[#allocation3 + $0x60] sm:$0xff] %vm904_vm2, %v1217_v36  ;;  %1702 = vst.msk [vmem:[#allocation3 + $0x50] sm:$0xff] %vm904_vm2, %v1686_v38  ;;  %v1220_v43 = vadd.f32 %v3344_v40, %v1204_v41  ;;  %v1684_v21 = vadd.f32 %v1668_v42, %v1629_v14 }
 0x171   : > { %v1177_v45 = vpop.f32.mrf.mxu0  ;;  %v1671_v47 = vld [vmem:[#allocation3 + $0x58] sm:$0xff]  ;;  %v3362_v50 = vpop.f32.mrf.mxu1  ;;  %v1820_v11 = vld [vmem:[#allocation3 + $0x20] sm:$0xff] }
 0x172   : > { %1236 = vst.msk [vmem:[#allocation3 + $0x78] sm:$0xff] %vm904_vm2, %v1220_v43  ;;  %1700 = vst.msk [vmem:[#allocation3 + $0x40] sm:$0xff] %vm904_vm2, %v1684_v21  ;;  %v1218_v49 = vadd.f32 %v1202_v46, %v1177_v45  ;;  %v1687_v48 = vadd.f32 %v3358_v28, %v1671_v47 }
 0x173   : > { %v1669_v51 = vld [vmem:[#allocation3 + $0x48] sm:$0xff]  ;;  %v3367_v12 = vpop.f32.mrf.mxu0  ;;  %v1648_v57 = vpop.f32.mrf.mxu1  ;;  %v1823_v4 = vld [vmem:[#allocation3 + $0x38] sm:$0xff] }
 0x174   : > { %1234 = vst.msk [vmem:[#allocation3 + $0x68] sm:$0xff] %vm904_vm2, %v1218_v49  ;;  %1703 = vst.msk [vmem:[#allocation3 + $0x58] sm:$0xff] %vm904_vm2, %v1687_v48  ;;  %v1685_v54 = vadd.f32 %v1669_v51, %v1632_v55  ;;  %v1834_v56 = vadd.f32 %v3367_v12, %v1818_v52 }
 0x175   : > { %v1674_v58 = vld [vmem:[#allocation3 + $0x70] sm:$0xff]  ;;  %v1753_v23 = vpop.f32.mrf.mxu0  ;;  %v3385_v37 = vpop.f32.mrf.mxu1  ;;  %v1821_v62 = vld [vmem:[#allocation3 + $0x28] sm:$0xff] }
 0x176   : > { %1701 = vst.msk [vmem:[#allocation3 + $0x48] sm:$0xff] %vm904_vm2, %v1685_v54  ;;  %1850 = vst.msk [vmem:[#allocation3 + $0x10] sm:$0xff] %vm904_vm2, %v1834_v56  ;;  %v1690_v60 = vadd.f32 %v3361_v39, %v1674_v58  ;;  %v1832_v61 = vadd.f32 %v1816_v59, %v1753_v23 }
 0x177   : > { %v1672_v63 = vld [vmem:[#allocation3 + $0x60] sm:$0xff]  ;;  %v3368_v0 = vpop.f32.mrf.mxu0  ;;  %v1909_v8 = vpop.f32.mrf.mxu1  ;;  %v1826_v36 = vld [vmem:[#allocation3 + $0x50] sm:$0xff] }
 0x178   : > { %1706 = vst.msk [vmem:[#allocation3 + $0x70] sm:$0xff] %vm904_vm2, %v1690_v60  ;;  %1848 = vst.msk [vmem:[#allocation3] sm:$0xff] %vm904_vm2, %v1832_v61  ;;  %v1688_v7 = vadd.f32 %v1672_v63, %v1645_v44  ;;  %v1835_v2 = vadd.f32 %v3368_v0, %v1819_v5 }
 0x179   : > { %v1675_v16 = vld [vmem:[#allocation3 + $0x78] sm:$0xff]  ;;  %v1756_v1 = vpop.f32.mrf.mxu0  ;;  %v3386_v19 = vpop.f32.mrf.mxu1  ;;  %v1824_v43 = vld [vmem:[#allocation3 + $0x40] sm:$0xff] }
 0x17a   : > { %1704 = vst.msk [vmem:[#allocation3 + $0x60] sm:$0xff] %vm904_vm2, %v1688_v7  ;;  %1851 = vst.msk [vmem:[#allocation3 + $0x18] sm:$0xff] %vm904_vm2, %v1835_v2  ;;  %v1691_v31 = vadd.f32 %v3362_v50, %v1675_v16  ;;  %v1833_v9 = vadd.f32 %v1817_v6, %v1756_v1 }
 0x17b   : > { %v1673_v13 = vld [vmem:[#allocation3 + $0x68] sm:$0xff]  ;;  %v3371_v15 = vpop.f32.mrf.mxu0  ;;  %v1912_v3 = vpop.f32.mrf.mxu1  ;;  %v1827_v49 = vld [vmem:[#allocation3 + $0x58] sm:$0xff] }
 0x17c   : > { %1707 = vst.msk [vmem:[#allocation3 + $0x78] sm:$0xff] %vm904_vm2, %v1691_v31  ;;  %1849 = vst.msk [vmem:[#allocation3 + $0x8] sm:$0xff] %vm904_vm2, %v1833_v9  ;;  %v1689_v10 = vadd.f32 %v1673_v13, %v1648_v57  ;;  %v1838_v20 = vadd.f32 %v3371_v15, %v1822_v17 }
 0x17d   : > { %v1769_v22 = vpop.f32.mrf.mxu0  ;;  %v1974_v24 = vld [vmem:[#allocation3 + $0x10] sm:$0xff]  ;;  %v3389_v25 = vpop.f32.mrf.mxu1  ;;  %v1825_v54 = vld [vmem:[#allocation3 + $0x48] sm:$0xff] }
 0x17e   : > { %1705 = vst.msk [vmem:[#allocation3 + $0x68] sm:$0xff] %vm904_vm2, %v1689_v10  ;;  %1854 = vst.msk [vmem:[#allocation3 + $0x30] sm:$0xff] %vm904_vm2, %v1838_v20  ;;  %v1836_v14 = vadd.f32 %v1820_v11, %v1769_v22  ;;  %v1990_v53 = vadd.f32 %v3385_v37, %v1974_v24 }
 0x17f   : > { %v3372_v26 = vpop.f32.mrf.mxu0  ;;  %v1972_v27 = vld [vmem:[#allocation3] sm:$0xff]  ;;  %v1925_v18 = vpop.f32.mrf.mxu1  ;;  %v1830_v60 = vld [vmem:[#allocation3 + $0x70] sm:$0xff] }
 0x180   : > { %1852 = vst.msk [vmem:[#allocation3 + $0x20] sm:$0xff] %vm904_vm2, %v1836_v14  ;;  %2006 = vst.msk [vmem:[#allocation3 + $0x10] sm:$0xff] %vm904_vm2, %v1990_v53  ;;  %v1839_v28 = vadd.f32 %v3372_v26, %v1823_v4  ;;  %v1988_v30 = vadd.f32 %v1972_v27, %v1909_v8 }
 0x181   : > { %v1772_v29 = vpop.f32.mrf.mxu0  ;;  %v1975_v32 = vld [vmem:[#allocation3 + $0x18] sm:$0xff]  ;;  %v3390_v34 = vpop.f32.mrf.mxu1  ;;  %v1828_v7 = vld [vmem:[#allocation3 + $0x60] sm:$0xff] }
 0x182   : > { %1855 = vst.msk [vmem:[#allocation3 + $0x38] sm:$0xff] %vm904_vm2, %v1839_v28  ;;  %2004 = vst.msk [vmem:[#allocation3] sm:$0xff] %vm904_vm2, %v1988_v30  ;;  %v1837_v55 = vadd.f32 %v1821_v62, %v1772_v29  ;;  %v1991_v33 = vadd.f32 %v3386_v19, %v1975_v32 }
 0x183   : > { %v3375_v35 = vpop.f32.mrf.mxu0  ;;  %v1973_v38 = vld [vmem:[#allocation3 + $0x8] sm:$0xff]  ;;  %v1928_v41 = vpop.f32.mrf.mxu1  ;;  %v1831_v31 = vld [vmem:[#allocation3 + $0x78] sm:$0xff] }
 0x184   : > { %1853 = vst.msk [vmem:[#allocation3 + $0x28] sm:$0xff] %vm904_vm2, %v1837_v55  ;;  %2007 = vst.msk [vmem:[#allocation3 + $0x18] sm:$0xff] %vm904_vm2, %v1991_v33  ;;  %v1842_v39 = vadd.f32 %v3375_v35, %v1826_v36  ;;  %v1989_v40 = vadd.f32 %v1973_v38, %v1912_v3 }
 0x185   : > { %v1785_v42 = vpop.f32.mrf.mxu0  ;;  %v1978_v21 = vld [vmem:[#allocation3 + $0x30] sm:$0xff]  ;;  %v3393_v46 = vpop.f32.mrf.mxu1  ;;  %v1829_v10 = vld [vmem:[#allocation3 + $0x68] sm:$0xff] }
 0x186   : > { %1858 = vst.msk [vmem:[#allocation3 + $0x50] sm:$0xff] %vm904_vm2, %v1842_v39  ;;  %2005 = vst.msk [vmem:[#allocation3 + $0x8] sm:$0xff] %vm904_vm2, %v1989_v40  ;;  %v1840_v44 = vadd.f32 %v1824_v43, %v1785_v42  ;;  %v1994_v45 = vadd.f32 %v3389_v25, %v1978_v21 }
 0x187   : > { %v3376_v47 = vpop.f32.mrf.mxu0  ;;  %v1976_v48 = vld [vmem:[#allocation3 + $0x20] sm:$0xff]  ;;  %v1941_v12 = vpop.f32.mrf.mxu1  ;;  %v2305_v53 = vld [vmem:[#allocation3 + $0x10] sm:$0xff] }
 0x188   : > { %1856 = vst.msk [vmem:[#allocation3 + $0x40] sm:$0xff] %vm904_vm2, %v1840_v44  ;;  %2010 = vst.msk [vmem:[#allocation3 + $0x30] sm:$0xff] %vm904_vm2, %v1994_v45  ;;  %v1843_v50 = vadd.f32 %v3376_v47, %v1827_v49  ;;  %v1992_v51 = vadd.f32 %v1976_v48, %v1925_v18 }
 0x189   : > { %v1788_v52 = vpop.f32.mrf.mxu0  ;;  %v1979_v56 = vld [vmem:[#allocation3 + $0x38] sm:$0xff]  ;;  %v3394_v23 = vpop.f32.mrf.mxu1  ;;  %v2303_v30 = vld [vmem:[#allocation3] sm:$0xff] }
 0x18a   : > { %1859 = vst.msk [vmem:[#allocation3 + $0x58] sm:$0xff] %vm904_vm2, %v1843_v50  ;;  %2008 = vst.msk [vmem:[#allocation3 + $0x20] sm:$0xff] %vm904_vm2, %v1992_v51  ;;  %v1841_v57 = vadd.f32 %v1825_v54, %v1788_v52  ;;  %v1995_v58 = vadd.f32 %v3390_v34, %v1979_v56 }
 0x18b   : > { %v3379_v59 = vpop.f32.mrf.mxu0  ;;  %v1977_v61 = vld [vmem:[#allocation3 + $0x28] sm:$0xff]  ;;  %v1944_v0 = vpop.f32.mrf.mxu1  ;;  %v2306_v33 = vld [vmem:[#allocation3 + $0x18] sm:$0xff] }
 0x18c   : > { %1857 = vst.msk [vmem:[#allocation3 + $0x48] sm:$0xff] %vm904_vm2, %v1841_v57  ;;  %2011 = vst.msk [vmem:[#allocation3 + $0x38] sm:$0xff] %vm904_vm2, %v1995_v58  ;;  %v1846_v37 = vadd.f32 %v3379_v59, %v1830_v60  ;;  %v1993_v63 = vadd.f32 %v1977_v61, %v1928_v41 }
 0x18d   : > { %v1801_v5 = vpop.f32.mrf.mxu0  ;;  %v1982_v2 = vld [vmem:[#allocation3 + $0x50] sm:$0xff]  ;;  %v3397_v1 = vpop.f32.mrf.mxu1  ;;  %v2304_v40 = vld [vmem:[#allocation3 + $0x8] sm:$0xff] }
 0x18e   : > { %1862 = vst.msk [vmem:[#allocation3 + $0x70] sm:$0xff] %vm904_vm2, %v1846_v37  ;;  %2009 = vst.msk [vmem:[#allocation3 + $0x28] sm:$0xff] %vm904_vm2, %v1993_v63  ;;  %v1844_v8 = vadd.f32 %v1828_v7, %v1801_v5  ;;  %v1998_v16 = vadd.f32 %v3393_v46, %v1982_v2 }
 0x18f   : > { %v3380_v6 = vpop.f32.mrf.mxu0  ;;  %v1980_v9 = vld [vmem:[#allocation3 + $0x40] sm:$0xff]  ;;  %v1957_v15 = vpop.f32.mrf.mxu1  ;;  %v2309_v45 = vld [vmem:[#allocation3 + $0x30] sm:$0xff] }
 0x190   : > { %1860 = vst.msk [vmem:[#allocation3 + $0x60] sm:$0xff] %vm904_vm2, %v1844_v8  ;;  %2014 = vst.msk [vmem:[#allocation3 + $0x50] sm:$0xff] %vm904_vm2, %v1998_v16  ;;  %v1847_v19 = vadd.f32 %v3380_v6, %v1831_v31  ;;  %v1996_v13 = vadd.f32 %v1980_v9, %v1941_v12 }
 0x191   : > { %v1804_v17 = vpop.f32.mrf.mxu0  ;;  %v1983_v20 = vld [vmem:[#allocation3 + $0x58] sm:$0xff]  ;;  %v3398_v11 = vpop.f32.mrf.mxu1  ;;  %v2307_v50 = vld [vmem:[#allocation3 + $0x20] sm:$0xff] }
 0x192   : > { %1863 = vst.msk [vmem:[#allocation3 + $0x78] sm:$0xff] %vm904_vm2, %v1847_v19  ;;  %2012 = vst.msk [vmem:[#allocation3 + $0x40] sm:$0xff] %vm904_vm2, %v1996_v13  ;;  %v1845_v3 = vadd.f32 %v1829_v10, %v1804_v17  ;;  %v1999_v22 = vadd.f32 %v3394_v23, %v1983_v20 }
 0x193   : > { %v1981_v24 = vld [vmem:[#allocation3 + $0x48] sm:$0xff]  ;;  %v3403_v14 = vpop.f32.mrf.mxu0  ;;  %v1960_v4 = vpop.f32.mrf.mxu1  ;;  %v2310_v57 = vld [vmem:[#allocation3 + $0x38] sm:$0xff] }
 0x194   : > { %1861 = vst.msk [vmem:[#allocation3 + $0x68] sm:$0xff] %vm904_vm2, %v1845_v3  ;;  %2015 = vst.msk [vmem:[#allocation3 + $0x58] sm:$0xff] %vm904_vm2, %v1999_v22  ;;  %v1997_v25 = vadd.f32 %v1981_v24, %v1944_v0  ;;  %v2321_v26 = vadd.f32 %v3403_v14, %v2305_v53 }
 0x195   : > { %v1986_v27 = vld [vmem:[#allocation3 + $0x70] sm:$0xff]  ;;  %v2240_v28 = vpop.f32.mrf.mxu0  ;;  %v3421_v62 = vpop.f32.mrf.mxu1  ;;  %v2308_v37 = vld [vmem:[#allocation3 + $0x28] sm:$0xff] }
 0x196   : > { %2013 = vst.msk [vmem:[#allocation3 + $0x48] sm:$0xff] %vm904_vm2, %v1997_v25  ;;  %2337 = vst.msk [vmem:[#allocation3 + $0x10] sm:$0xff] %vm904_vm2, %v2321_v26  ;;  %v2002_v18 = vadd.f32 %v3397_v1, %v1986_v27  ;;  %v2319_v29 = vadd.f32 %v2303_v30, %v2240_v28 }
 0x197   : > { %v1984_v32 = vld [vmem:[#allocation3 + $0x60] sm:$0xff]  ;;  %v3404_v55 = vpop.f32.mrf.mxu0  ;;  %v2396_v36 = vpop.f32.mrf.mxu1  ;;  %v2313_v8 = vld [vmem:[#allocation3 + $0x50] sm:$0xff] }
 0x198   : > { %2018 = vst.msk [vmem:[#allocation3 + $0x70] sm:$0xff] %vm904_vm2, %v2002_v18  ;;  %2335 = vst.msk [vmem:[#allocation3] sm:$0xff] %vm904_vm2, %v2319_v29  ;;  %v2000_v34 = vadd.f32 %v1984_v32, %v1957_v15  ;;  %v2322_v35 = vadd.f32 %v3404_v55, %v2306_v33 }
 0x199   : > { %v1987_v38 = vld [vmem:[#allocation3 + $0x78] sm:$0xff]  ;;  %v2243_v39 = vpop.f32.mrf.mxu0  ;;  %v3422_v43 = vpop.f32.mrf.mxu1  ;;  %v2311_v19 = vld [vmem:[#allocation3 + $0x40] sm:$0xff] }
 0x19a   : > { %2016 = vst.msk [vmem:[#allocation3 + $0x60] sm:$0xff] %vm904_vm2, %v2000_v34  ;;  %2338 = vst.msk [vmem:[#allocation3 + $0x18] sm:$0xff] %vm904_vm2, %v2322_v35  ;;  %v2003_v41 = vadd.f32 %v3398_v11, %v1987_v38  ;;  %v2320_v42 = vadd.f32 %v2304_v40, %v2243_v39 }
 0x19b   : > { %v1985_v21 = vld [vmem:[#allocation3 + $0x68] sm:$0xff]  ;;  %v3407_v44 = vpop.f32.mrf.mxu0  ;;  %v2399_v49 = vpop.f32.mrf.mxu1  ;;  %v2314_v3 = vld [vmem:[#allocation3 + $0x58] sm:$0xff] }
 0x19c   : > { %2019 = vst.msk [vmem:[#allocation3 + $0x78] sm:$0xff] %vm904_vm2, %v2003_v41  ;;  %2336 = vst.msk [vmem:[#allocation3 + $0x8] sm:$0xff] %vm904_vm2, %v2320_v42  ;;  %v2001_v46 = vadd.f32 %v1985_v21, %v1960_v4  ;;  %v2325_v47 = vadd.f32 %v3407_v44, %v2309_v45 }
 0x19d   : > { %v2256_v48 = vpop.f32.mrf.mxu0  ;;  %v2461_v51 = vld [vmem:[#allocation3 + $0x10] sm:$0xff]  ;;  %v3425_v54 = vpop.f32.mrf.mxu1  ;;  %v2312_v25 = vld [vmem:[#allocation3 + $0x48] sm:$0xff] }
 0x19e   : > { %2017 = vst.msk [vmem:[#allocation3 + $0x68] sm:$0xff] %vm904_vm2, %v2001_v46  ;;  %2341 = vst.msk [vmem:[#allocation3 + $0x30] sm:$0xff] %vm904_vm2, %v2325_v47  ;;  %v2323_v12 = vadd.f32 %v2307_v50, %v2256_v48  ;;  %v2477_v52 = vadd.f32 %v3421_v62, %v2461_v51 }
 0x19f   : > { %v3408_v56 = vpop.f32.mrf.mxu0  ;;  %v2459_v58 = vld [vmem:[#allocation3] sm:$0xff]  ;;  %v2412_v60 = vpop.f32.mrf.mxu1  ;;  %v2317_v18 = vld [vmem:[#allocation3 + $0x70] sm:$0xff] }
 0x1a0   : > { %2339 = vst.msk [vmem:[#allocation3 + $0x20] sm:$0xff] %vm904_vm2, %v2323_v12  ;;  %2493 = vst.msk [vmem:[#allocation3 + $0x10] sm:$0xff] %vm904_vm2, %v2477_v52  ;;  %v2326_v23 = vadd.f32 %v3408_v56, %v2310_v57  ;;  %v2475_v59 = vadd.f32 %v2459_v58, %v2396_v36 }
 0x1a1   : > { %v2259_v61 = vpop.f32.mrf.mxu0  ;;  %v2462_v63 = vld [vmem:[#allocation3 + $0x18] sm:$0xff]  ;;  %v3426_v7 = vpop.f32.mrf.mxu1  ;;  %v2315_v34 = vld [vmem:[#allocation3 + $0x60] sm:$0xff] }
 0x1a2   : > { %2342 = vst.msk [vmem:[#allocation3 + $0x38] sm:$0xff] %vm904_vm2, %v2326_v23  ;;  %2491 = vst.msk [vmem:[#allocation3] sm:$0xff] %vm904_vm2, %v2475_v59  ;;  %v2324_v0 = vadd.f32 %v2308_v37, %v2259_v61  ;;  %v2478_v5 = vadd.f32 %v3422_v43, %v2462_v63 }
 0x1a3   : > { %v3411_v2 = vpop.f32.mrf.mxu0  ;;  %v2460_v16 = vld [vmem:[#allocation3 + $0x8] sm:$0xff]  ;;  %v2415_v31 = vpop.f32.mrf.mxu1  ;;  %v2318_v41 = vld [vmem:[#allocation3 + $0x78] sm:$0xff] }
 0x1a4   : > { %2340 = vst.msk [vmem:[#allocation3 + $0x28] sm:$0xff] %vm904_vm2, %v2324_v0  ;;  %2494 = vst.msk [vmem:[#allocation3 + $0x18] sm:$0xff] %vm904_vm2, %v2478_v5  ;;  %v2329_v1 = vadd.f32 %v3411_v2, %v2313_v8  ;;  %v2476_v6 = vadd.f32 %v2460_v16, %v2399_v49 }
 0x1a5   : > { %v2272_v9 = vpop.f32.mrf.mxu0  ;;  %v2465_v13 = vld [vmem:[#allocation3 + $0x30] sm:$0xff]  ;;  %v3429_v10 = vpop.f32.mrf.mxu1  ;;  %v2316_v45 = vld [vmem:[#allocation3 + $0x68] sm:$0xff] }
 0x1a6   : > { %2345 = vst.msk [vmem:[#allocation3 + $0x50] sm:$0xff] %vm904_vm2, %v2329_v1  ;;  %2492 = vst.msk [vmem:[#allocation3 + $0x8] sm:$0xff] %vm904_vm2, %v2476_v6  ;;  %v2327_v15 = vadd.f32 %v2311_v19, %v2272_v9  ;;  %v2481_v17 = vadd.f32 %v3425_v54, %v2465_v13 }
 0x1a7   : > { %v3412_v20 = vpop.f32.mrf.mxu0  ;;  %v2463_v22 = vld [vmem:[#allocation3 + $0x20] sm:$0xff]  ;;  %v2428_v14 = vpop.f32.mrf.mxu1  ;;  %v2617_v12 = vld [vmem:[#allocation3 + $0x10] sm:$0xff] }
 0x1a8   : > { %2343 = vst.msk [vmem:[#allocation3 + $0x40] sm:$0xff] %vm904_vm2, %v2327_v15  ;;  %2497 = vst.msk [vmem:[#allocation3 + $0x30] sm:$0xff] %vm904_vm2, %v2481_v17  ;;  %v2330_v11 = vadd.f32 %v3412_v20, %v2314_v3  ;;  %v2479_v24 = vadd.f32 %v2463_v22, %v2412_v60 }
 0x1a9   : > { %v2275_v53 = vpop.f32.mrf.mxu0  ;;  %v2466_v26 = vld [vmem:[#allocation3 + $0x38] sm:$0xff]  ;;  %v3430_v28 = vpop.f32.mrf.mxu1  ;;  %v2615_v58 = vld [vmem:[#allocation3] sm:$0xff] }
 0x1aa   : > { %2346 = vst.msk [vmem:[#allocation3 + $0x58] sm:$0xff] %vm904_vm2, %v2330_v11  ;;  %2495 = vst.msk [vmem:[#allocation3 + $0x20] sm:$0xff] %vm904_vm2, %v2479_v24  ;;  %v2328_v4 = vadd.f32 %v2312_v25, %v2275_v53  ;;  %v2482_v27 = vadd.f32 %v3426_v7, %v2466_v26 }
 0x1ab   : > { %v3415_v30 = vpop.f32.mrf.mxu0  ;;  %v2464_v29 = vld [vmem:[#allocation3 + $0x28] sm:$0xff]  ;;  %v2431_v55 = vpop.f32.mrf.mxu1  ;;  %v2618_v63 = vld [vmem:[#allocation3 + $0x18] sm:$0xff] }
 0x1ac   : > { %2344 = vst.msk [vmem:[#allocation3 + $0x48] sm:$0xff] %vm904_vm2, %v2328_v4  ;;  %2498 = vst.msk [vmem:[#allocation3 + $0x38] sm:$0xff] %vm904_vm2, %v2482_v27  ;;  %v2333_v62 = vadd.f32 %v3415_v30, %v2317_v18  ;;  %v2480_v32 = vadd.f32 %v2464_v29, %v2415_v31 }
 0x1ad   : > { %v2288_v33 = vpop.f32.mrf.mxu0  ;;  %v2469_v35 = vld [vmem:[#allocation3 + $0x50] sm:$0xff]  ;;  %v3433_v39 = vpop.f32.mrf.mxu1  ;;  %v2616_v8 = vld [vmem:[#allocation3 + $0x8] sm:$0xff] }
 0x1ae   : > { %2349 = vst.msk [vmem:[#allocation3 + $0x70] sm:$0xff] %vm904_vm2, %v2333_v62  ;;  %2496 = vst.msk [vmem:[#allocation3 + $0x28] sm:$0xff] %vm904_vm2, %v2480_v32  ;;  %v2331_v36 = vadd.f32 %v2315_v34, %v2288_v33  ;;  %v2485_v38 = vadd.f32 %v3429_v10, %v2469_v35 }
 0x1af   : > { %v3416_v40 = vpop.f32.mrf.mxu0  ;;  %v2467_v42 = vld [vmem:[#allocation3 + $0x40] sm:$0xff]  ;;  %v2444_v47 = vpop.f32.mrf.mxu1  ;;  %v2621_v19 = vld [vmem:[#allocation3 + $0x30] sm:$0xff] }
 0x1b0   : > { %2347 = vst.msk [vmem:[#allocation3 + $0x60] sm:$0xff] %vm904_vm2, %v2331_v36  ;;  %2501 = vst.msk [vmem:[#allocation3 + $0x50] sm:$0xff] %vm904_vm2, %v2485_v38  ;;  %v2334_v43 = vadd.f32 %v3416_v40, %v2318_v41  ;;  %v2483_v21 = vadd.f32 %v2467_v42, %v2428_v14  ;;  %v4276_v14 = vld [vmem:[%s4398_s2] ss:$0 sm:$0xff] }
 0x1b1   : > { %v2291_v44 = vpop.f32.mrf.mxu0  ;;  %v2470_v46 = vld [vmem:[#allocation3 + $0x58] sm:$0xff]  ;;  %v3434_v23 = vpop.f32.mrf.mxu1  ;;  %v2619_v10 = vld [vmem:[#allocation3 + $0x20] sm:$0xff] }
 0x1b2   : > { %2350 = vst.msk [vmem:[#allocation3 + $0x78] sm:$0xff] %vm904_vm2, %v2334_v43  ;;  %2499 = vst.msk [vmem:[#allocation3 + $0x40] sm:$0xff] %vm904_vm2, %v2483_v21  ;;  %v2332_v49 = vadd.f32 %v2316_v45, %v2291_v44  ;;  %v2486_v48 = vadd.f32 %v3430_v28, %v2470_v46 }
 0x1b3   : > { %v2468_v50 = vld [vmem:[#allocation3 + $0x48] sm:$0xff]  ;;  %v3439_v51 = vpop.f32.mrf.mxu0  ;;  %v2447_v16 = vpop.f32.mrf.mxu1  ;;  %v2622_v22 = vld [vmem:[#allocation3 + $0x38] sm:$0xff] }
 0x1b4   : > { %2348 = vst.msk [vmem:[#allocation3 + $0x68] sm:$0xff] %vm904_vm2, %v2332_v49  ;;  %2502 = vst.msk [vmem:[#allocation3 + $0x58] sm:$0xff] %vm904_vm2, %v2486_v48  ;;  %v2484_v52 = vadd.f32 %v2468_v50, %v2431_v55  ;;  %v2633_v54 = vadd.f32 %v3439_v51, %v2617_v12 }
 0x1b5   : > { %v2473_v56 = vld [vmem:[#allocation3 + $0x70] sm:$0xff]  ;;  %v2552_v57 = vpop.f32.mrf.mxu0  ;;  %v2620_v26 = vld [vmem:[#allocation3 + $0x28] sm:$0xff] }
 0x1b6   : > { %2500 = vst.msk [vmem:[#allocation3 + $0x48] sm:$0xff] %vm904_vm2, %v2484_v52  ;;  %2649 = vst.msk [vmem:[#allocation3 + $0x10] sm:$0xff] %vm904_vm2, %v2633_v54  ;;  %v2489_v59 = vadd.f32 %v3433_v39, %v2473_v56  ;;  %v2631_v60 = vadd.f32 %v2615_v58, %v2552_v57 }
 0x1b7   : > { %v2471_v61 = vld [vmem:[#allocation3 + $0x60] sm:$0xff]  ;;  %v3440_v37 = vpop.f32.mrf.mxu0  ;;  %v2625_v29 = vld [vmem:[#allocation3 + $0x50] sm:$0xff] }
 0x1b8   : > { %2505 = vst.msk [vmem:[#allocation3 + $0x70] sm:$0xff] %vm904_vm2, %v2489_v59  ;;  %2647 = vst.msk [vmem:[#allocation3] sm:$0xff] %vm904_vm2, %v2631_v60  ;;  %v2487_v0 = vadd.f32 %v2471_v61, %v2444_v47  ;;  %v2634_v5 = vadd.f32 %v3440_v37, %v2618_v63 }
 0x1b9   : > { %v2474_v7 = vld [vmem:[#allocation3 + $0x78] sm:$0xff]  ;;  %v2555_v2 = vpop.f32.mrf.mxu0  ;;  %v2623_v35 = vld [vmem:[#allocation3 + $0x40] sm:$0xff] }
 0x1ba   : > { %2503 = vst.msk [vmem:[#allocation3 + $0x60] sm:$0xff] %vm904_vm2, %v2487_v0  ;;  %2650 = vst.msk [vmem:[#allocation3 + $0x18] sm:$0xff] %vm904_vm2, %v2634_v5  ;;  %v2490_v1 = vadd.f32 %v3434_v23, %v2474_v7  ;;  %v2632_v6 = vadd.f32 %v2616_v8, %v2555_v2 }
 0x1bb   : > { %v2472_v31 = vld [vmem:[#allocation3 + $0x68] sm:$0xff]  ;;  %v3443_v9 = vpop.f32.mrf.mxu0  ;;  %v2626_v42 = vld [vmem:[#allocation3 + $0x58] sm:$0xff] }
 0x1bc   : > { %2506 = vst.msk [vmem:[#allocation3 + $0x78] sm:$0xff] %vm904_vm2, %v2490_v1  ;;  %2648 = vst.msk [vmem:[#allocation3 + $0x8] sm:$0xff] %vm904_vm2, %v2632_v6  ;;  %v2488_v13 = vadd.f32 %v2472_v31, %v2447_v16  ;;  %v2637_v15 = vadd.f32 %v3443_v9, %v2621_v19 }
 0x1bd   : > { %v2568_v17 = vpop.f32.mrf.mxu0  ;;  %v2665_v53 = vld [vmem:[#allocation3 + $0x10] sm:$0xff]  ;;  %v2624_v49 = vld [vmem:[#allocation3 + $0x48] sm:$0xff] }
 0x1be   : > { %2504 = vst.msk [vmem:[#allocation3 + $0x68] sm:$0xff] %vm904_vm2, %v2488_v13  ;;  %2653 = vst.msk [vmem:[#allocation3 + $0x30] sm:$0xff] %vm904_vm2, %v2637_v15  ;;  %v2635_v20 = vadd.f32 %v2619_v10, %v2568_v17  ;;  %v2688_v32 = vadd.f32 %v4276_v14, %v2665_v53 }
 0x1bf   : > { %v3444_v3 = vpop.f32.mrf.mxu0  ;;  %v2663_v11 = vld [vmem:[#allocation3] sm:$0xff]  ;;  %v2629_v56 = vld [vmem:[#allocation3 + $0x70] sm:$0xff] }
 0x1c0   : > { %2651 = vst.msk [vmem:[#allocation3 + $0x20] sm:$0xff] %vm904_vm2, %v2635_v20  ;;  %v2638_v24 = vadd.f32 %v3444_v3, %v2622_v22  ;;  %v2686_v28 = vadd.f32 %v4276_v14, %v2663_v11  ;;  %v2704_v43 = vmax.f32 %v2688_v32, 0.0 }
 0x1c1   : > { %v2571_v25 = vpop.f32.mrf.mxu0  ;;  %v2666_v4 = vld [vmem:[#allocation3 + $0x18] sm:$0xff]  ;;  %v2627_v61 = vld [vmem:[#allocation3 + $0x60] sm:$0xff] }
 0x1c2   : > { %2654 = vst.msk [vmem:[#allocation3 + $0x38] sm:$0xff] %vm904_vm2, %v2638_v24  ;;  %v2636_v27 = vadd.f32 %v2620_v26, %v2571_v25  ;;  %v2689_v30 = vadd.f32 %v4276_v14, %v2666_v4  ;;  %v2702_v39 = vmax.f32 %v2686_v28, 0.0 }
 0x1c3   : > { %v3447_v18 = vpop.f32.mrf.mxu0  ;;  %v2664_v62 = vld [vmem:[#allocation3 + $0x8] sm:$0xff]  ;;  %v2630_v2 = vld [vmem:[#allocation3 + $0x78] sm:$0xff] }
 0x1c4   : > { %2652 = vst.msk [vmem:[#allocation3 + $0x28] sm:$0xff] %vm904_vm2, %v2636_v27  ;;  %v2641_v55 = vadd.f32 %v3447_v18, %v2625_v29  ;;  %v2687_v33 = vadd.f32 %v4276_v14, %v2664_v62  ;;  %v2705_v36 = vmax.f32 %v2689_v30, 0.0 }
 0x1c5   : > { %v2584_v34 = vpop.f32.mrf.mxu0  ;;  %v2669_v46 = vld [vmem:[#allocation3 + $0x30] sm:$0xff]  ;;  %v2628_v19 = vld [vmem:[#allocation3 + $0x68] sm:$0xff] }
 0x1c6   : > { %2657 = vst.msk [vmem:[#allocation3 + $0x50] sm:$0xff] %vm904_vm2, %v2641_v55  ;;  %v2639_v38 = vadd.f32 %v2623_v35, %v2584_v34  ;;  %v2703_v40 = vmax.f32 %v2687_v33, 0.0  ;;  %v2719_v48 = vpack.c.bf16 %v2705_v36, %v2704_v43  ;;  %v2692_v58 = vadd.f32 %v4276_v14, %v2669_v46 }
 0x1c7   : > { %v3448_v41 = vpop.f32.mrf.mxu0  ;;  %v2667_v21 = vld [vmem:[#allocation3 + $0x20] sm:$0xff] }
 0x1c8   : > { %2655 = vst.msk [vmem:[#allocation3 + $0x40] sm:$0xff] %vm904_vm2, %v2639_v38  ;;  %v2642_v44 = vadd.f32 %v3448_v41, %v2626_v42  ;;  %v2718_v45 = vpack.c.bf16 %v2703_v40, %v2702_v39  ;;  %v2690_v12 = vadd.f32 %v4276_v14, %v2667_v21  ;;  %v2708_v8 = vmax.f32 %v2692_v58, 0.0  ;;  %v4315_v41 = vld [vmem:[%s4400_s4] ss:$0 sm:$0xff]  ;;  %v2861_v42 = vld [vmem:[%s3715_s8 + $0x10] sm:$0xff] }
 0x1c9   : > { %v2587_v47 = vpop.f32.mrf.mxu0  ;;  %v2670_v50 = vld [vmem:[#allocation3 + $0x38] sm:$0xff] }
 0x1ca   : > { %2658 = vst.msk [vmem:[#allocation3 + $0x58] sm:$0xff] %vm904_vm2, %v2642_v44  ;;  %v2640_v51 = vadd.f32 %v2624_v49, %v2587_v47  ;;  %3455 = vmatprep.mubr.msk.bf16.mxu1 %vm904_vm2, %v2718_v45  ;;  %v2693_v52 = vadd.f32 %v4276_v14, %v2670_v50  ;;  %v2706_v0 = vmax.f32 %v2690_v12, 0.0  ;;  %v2859_v44 = vld [vmem:[%s3715_s8] sm:$0xff]  ;;  %v2862_v49 = vld [vmem:[%s3715_s8 + $0x18] sm:$0xff]  ;;  %v2860_v12 = vld [vmem:[%s3715_s8 + $0x8] sm:$0xff] }
 0x1cb   : > { %v3451_v54 = vpop.f32.mrf.mxu0  ;;  %3456 = vmatmul.mubr.msk.bf16.vlgmr.msra.gmra.mxu1 %vm904_vm2, %v2719_v48  ;;  %v2668_v57 = vld [vmem:[#allocation3 + $0x28] sm:$0xff] }
 0x1cc   : > { %2656 = vst.msk [vmem:[#allocation3 + $0x48] sm:$0xff] %vm904_vm2, %v2640_v51  ;;  %v2645_v23 = vadd.f32 %v3451_v54, %v2629_v56  ;;  %v2691_v59 = vadd.f32 %v4276_v14, %v2668_v57  ;;  %v2709_v37 = vmax.f32 %v2693_v52, 0.0  ;;  %v2865_v57 = vld [vmem:[%s3715_s8 + $0x30] sm:$0xff] }
 0x1cd   : > { %v2600_v60 = vpop.f32.mrf.mxu0  ;;  %v2673_v31 = vld [vmem:[#allocation3 + $0x50] sm:$0xff] }
 0x1ce   : > { %2661 = vst.msk [vmem:[#allocation3 + $0x70] sm:$0xff] %vm904_vm2, %v2645_v23  ;;  %v2643_v63 = vadd.f32 %v2627_v61, %v2600_v60  ;;  %v2707_v5 = vmax.f32 %v2691_v59, 0.0  ;;  %v2721_v13 = vpack.c.bf16 %v2709_v37, %v2708_v8  ;;  %v2696_v22 = vadd.f32 %v4276_v14, %v2673_v31  ;;  %v2863_v60 = vld [vmem:[%s3715_s8 + $0x20] sm:$0xff]  ;;  %v2864_v8 = vld [vmem:[%s3715_s8 + $0x28] sm:$0xff]  ;;  %v2869_v31 = vld [vmem:[%s3715_s8 + $0x50] sm:$0xff] }
 0x1cf   : > { %v3452_v7 = vpop.f32.mrf.mxu0  ;;  %v2671_v16 = vld [vmem:[#allocation3 + $0x40] sm:$0xff] }
 0x1d0   : > { %2659 = vst.msk [vmem:[#allocation3 + $0x60] sm:$0xff] %vm904_vm2, %v2643_v63  ;;  %v2646_v1 = vadd.f32 %v3452_v7, %v2630_v2  ;;  %v2720_v6 = vpack.c.bf16 %v2707_v5, %v2706_v0  ;;  %v2694_v10 = vadd.f32 %v4276_v14, %v2671_v16  ;;  %v2712_v26 = vmax.f32 %v2696_v22, 0.0  ;;  %v2866_v0 = vld [vmem:[%s3715_s8 + $0x38] sm:$0xff] }
 0x1d1   : > { %v2603_v9 = vpop.f32.mrf.mxu0  ;;  %v2674_v15 = vld [vmem:[#allocation3 + $0x58] sm:$0xff] }
 0x1d2   : > { %2662 = vst.msk [vmem:[#allocation3 + $0x78] sm:$0xff] %vm904_vm2, %v2646_v1  ;;  %v2644_v17 = vadd.f32 %v2628_v19, %v2603_v9  ;;  %3459 = vmatprep.mubr.msk.bf16.mxu1 %vm904_vm2, %v2720_v6  ;;  %v2697_v20 = vadd.f32 %v4276_v14, %v2674_v15  ;;  %v2710_v53 = vmax.f32 %v2694_v10, 0.0  ;;  %v2867_v15 = vld [vmem:[%s3715_s8 + $0x40] sm:$0xff] }
 0x1d3   : > { %3460 = vmatmul.mubr.msk.bf16.gmra.mxu1 %vm904_vm2, %v2721_v13  ;;  %v2672_v3 = vld [vmem:[#allocation3 + $0x48] sm:$0xff] }
 0x1d4   : > { %2660 = vst.msk [vmem:[#allocation3 + $0x68] sm:$0xff] %vm904_vm2, %v2644_v17  ;;  %v2695_v11 = vadd.f32 %v4276_v14, %v2672_v3  ;;  %v2713_v24 = vmax.f32 %v2697_v20, 0.0  ;;  %v2870_v3 = vld [vmem:[%s3715_s8 + $0x58] sm:$0xff] }
 0x1d5   : > { %v2677_v28 = vld [vmem:[#allocation3 + $0x70] sm:$0xff] }
 0x1d6   : > { %v2711_v25 = vmax.f32 %v2695_v11, 0.0  ;;  %v2723_v30 = vpack.c.bf16 %v2713_v24, %v2712_v26  ;;  %v2700_v55 = vadd.f32 %v4276_v14, %v2677_v28 }
 0x1d7   : > { %v2675_v4 = vld [vmem:[#allocation3 + $0x60] sm:$0xff] }
 0x1d8   : > { %v2722_v27 = vpack.c.bf16 %v2711_v25, %v2710_v53  ;;  %v2698_v29 = vadd.f32 %v4276_v14, %v2675_v4  ;;  %v2716_v38 = vmax.f32 %v2700_v55, 0.0  ;;  %v2868_v53 = vld [vmem:[%s3715_s8 + $0x48] sm:$0xff] }
 0x1d9   : > { %v2678_v18 = vld [vmem:[#allocation3 + $0x78] sm:$0xff] }
 0x1da   : > { %3463 = vmatprep.mubr.msk.bf16.mxu1 %vm904_vm2, %v2722_v27  ;;  %v2701_v62 = vadd.f32 %v4276_v14, %v2678_v18  ;;  %v2714_v35 = vmax.f32 %v2698_v29, 0.0  ;;  %v2873_v27 = vld [vmem:[%s3715_s8 + $0x70] sm:$0xff]  ;;  %v2871_v29 = vld [vmem:[%s3715_s8 + $0x60] sm:$0xff] }
 0x1db   : > { %3464 = vmatmul.mubr.msk.bf16.gmra.mxu1 %vm904_vm2, %v2723_v30  ;;  %v2676_v32 = vld [vmem:[#allocation3 + $0x68] sm:$0xff] }
 0x1dc   : > { %v2699_v33 = vadd.f32 %v4276_v14, %v2676_v32  ;;  %v2717_v34 = vmax.f32 %v2701_v62, 0.0 }
 0x1de   : > { %v2715_v36 = vmax.f32 %v2699_v33, 0.0  ;;  %v2725_v40 = vpack.c.bf16 %v2717_v34, %v2716_v38  ;;  %v2874_v33 = vld [vmem:[%s3715_s8 + $0x78] sm:$0xff]  ;;  %v2872_v38 = vld [vmem:[%s3715_s8 + $0x68] sm:$0xff] }
 0x1e0   : > { %v2724_v39 = vpack.c.bf16 %v2715_v36, %v2714_v35 }
 0x1e2   : > { %3467 = vmatprep.mubr.msk.bf16.mxu1 %vm904_vm2, %v2724_v39 }
 0x1e3   : > { %3468 = vmatmul.mubr.msk.bf16.gmra.mxu1 %vm904_vm2, %v2725_v40 }
 0x28b   : > { %v3457_v14 = vpop.f32.mrf.mxu1 }
 0x28c   : > { %v2805_v43 = vadd.f32 %v3457_v14, %v4315_v41 }
 0x28d   : > { %v2796_v21 = vpop.f32.mrf.mxu1 }
 0x28e   : > { %v2877_v45 = vadd.f32 %v2861_v42, %v2805_v43  ;;  %v2797_v46 = vadd.f32 %v4315_v41, %v2796_v21 }
 0x28f   : > { %v3458_v47 = vpop.f32.mrf.mxu1 }
 0x290   : > { %2893 = vst.msk [vmem:[%s3728_s14 + $0x10] sm:$0xff] %vm778_vm10, %v2877_v45  ;;  %v2875_v48 = vadd.f32 %v2859_v44, %v2797_v46  ;;  %v2808_v50 = vadd.f32 %v3458_v47, %v4315_v41 }
 0x291   : > { %v2799_v51 = vpop.f32.mrf.mxu1 }
 0x292   : > { %2891 = vst.msk [vmem:[%s3728_s14] sm:$0xff] %vm778_vm10, %v2875_v48  ;;  %v2878_v52 = vadd.f32 %v2862_v49, %v2808_v50  ;;  %v2800_v54 = vadd.f32 %v4315_v41, %v2799_v51 }
 0x293   : > { %v3461_v56 = vpop.f32.mrf.mxu1 }
 0x294   : > { %2894 = vst.msk [vmem:[%s3728_s14 + $0x18] sm:$0xff] %vm778_vm10, %v2878_v52  ;;  %v2876_v58 = vadd.f32 %v2860_v12, %v2800_v54  ;;  %v2821_v23 = vadd.f32 %v3461_v56, %v4315_v41 }
 0x295   : > { %v2812_v59 = vpop.f32.mrf.mxu1 }
 0x296   : > { %2892 = vst.msk [vmem:[%s3728_s14 + $0x8] sm:$0xff] %vm778_vm10, %v2876_v58  ;;  %v2881_v61 = vadd.f32 %v2865_v57, %v2821_v23  ;;  %v2813_v37 = vadd.f32 %v4315_v41, %v2812_v59 }
 0x297   : > { %v3462_v63 = vpop.f32.mrf.mxu1 }
 0x298   : > { %2897 = vst.msk [vmem:[%s3728_s14 + $0x30] sm:$0xff] %vm778_vm10, %v2881_v61  ;;  %v2879_v5 = vadd.f32 %v2863_v60, %v2813_v37  ;;  %v2824_v7 = vadd.f32 %v3462_v63, %v4315_v41 }
 0x299   : > { %v2815_v2 = vpop.f32.mrf.mxu1 }
 0x29a   : > { %2895 = vst.msk [vmem:[%s3728_s14 + $0x20] sm:$0xff] %vm778_vm10, %v2879_v5  ;;  %v2882_v16 = vadd.f32 %v2866_v0, %v2824_v7  ;;  %v2816_v1 = vadd.f32 %v4315_v41, %v2815_v2 }
 0x29b   : > { %v3465_v6 = vpop.f32.mrf.mxu1 }
 0x29c   : > { %2898 = vst.msk [vmem:[%s3728_s14 + $0x38] sm:$0xff] %vm778_vm10, %v2882_v16  ;;  %v2880_v9 = vadd.f32 %v2864_v8, %v2816_v1  ;;  %v2837_v19 = vadd.f32 %v3465_v6, %v4315_v41 }
 0x29d   : > { %v2828_v13 = vpop.f32.mrf.mxu1 }
 0x29e   : > { %2896 = vst.msk [vmem:[%s3728_s14 + $0x28] sm:$0xff] %vm778_vm10, %v2880_v9  ;;  %v2885_v17 = vadd.f32 %v2869_v31, %v2837_v19  ;;  %v2829_v10 = vadd.f32 %v4315_v41, %v2828_v13 }
 0x29f   : > { %v3466_v20 = vpop.f32.mrf.mxu1 }
 0x2a0   : > { %2901 = vst.msk [vmem:[%s3728_s14 + $0x50] sm:$0xff] %vm778_vm10, %v2885_v17  ;;  %v2883_v22 = vadd.f32 %v2867_v15, %v2829_v10  ;;  %v2840_v11 = vadd.f32 %v3466_v20, %v4315_v41 }
 0x2a1   : > { %v2831_v24 = vpop.f32.mrf.mxu1 }
 0x2a2   : > { %2899 = vst.msk [vmem:[%s3728_s14 + $0x40] sm:$0xff] %vm778_vm10, %v2883_v22  ;;  %v2886_v25 = vadd.f32 %v2870_v3, %v2840_v11  ;;  %v2832_v26 = vadd.f32 %v4315_v41, %v2831_v24 }
 0x2a3   : > { %v3469_v4 = vpop.f32.mrf.mxu1 }
 0x2a4   : > { %2902 = vst.msk [vmem:[%s3728_s14 + $0x58] sm:$0xff] %vm778_vm10, %v2886_v25  ;;  %v2884_v28 = vadd.f32 %v2868_v53, %v2832_v26  ;;  %v2853_v30 = vadd.f32 %v3469_v4, %v4315_v41 }
 0x2a5   : > { %v2844_v18 = vpop.f32.mrf.mxu1 }
 0x2a6   : > { %2900 = vst.msk [vmem:[%s3728_s14 + $0x48] sm:$0xff] %vm778_vm10, %v2884_v28  ;;  %v2889_v62 = vadd.f32 %v2873_v27, %v2853_v30  ;;  %v2845_v32 = vadd.f32 %v4315_v41, %v2844_v18 }
 0x2a7   : > { %v3470_v55 = vpop.f32.mrf.mxu1 }
 0x2a8   : > { %2905 = vst.msk [vmem:[%s3728_s14 + $0x70] sm:$0xff] %vm778_vm10, %v2889_v62  ;;  %v2887_v34 = vadd.f32 %v2871_v29, %v2845_v32  ;;  %v2856_v35 = vadd.f32 %v3470_v55, %v4315_v41 }
 0x2a9   : > { %v2847_v36 = vpop.f32.mrf.mxu1 }
 0x2aa   : > { %2903 = vst.msk [vmem:[%s3728_s14 + $0x60] sm:$0xff] %vm778_vm10, %v2887_v34  ;;  %v2890_v39 = vadd.f32 %v2874_v33, %v2856_v35  ;;  %v2848_v40 = vadd.f32 %v4315_v41, %v2847_v36 }
 0x2ac   : > { %2906 = vst.msk [vmem:[%s3728_s14 + $0x78] sm:$0xff] %vm778_vm10, %v2890_v39  ;;  %v2888_v14 = vadd.f32 %v2872_v38, %v2848_v40 }
 0x2ae   : > { %2904 = vst.msk [vmem:[%s3728_s14 + $0x68] sm:$0xff] %vm778_vm10, %v2888_v14 }
 0x2af PF: > { %s15_s22 = sadd.s32 1, %s3570_s22   ;;  %s4414_s18 = smov %s3562_s20 }
 0x2b0   : > { %p12_p9 = scmp.ge.s32.totalorder %s15_s22, 6   ;;  %s4415_s19 = smov %s3566_s21 }
 0x2b1   : > { %s4416_s20 = smov %s4419_s23  ;;  %s4417_s21 = smov %s4423_s24 }
 0x2b2   :  { %14 = sbr.rel (!%p12_p9) target bundleno = 3 (0x3), region = 91 }

</bundles_post_ra>
